<compile_context>
chip_gen: v7x
topology: tpu7x:2x2x1
jax: 0.10.0
libtpu: 0.0.40
codegen_flags: <defaults>
</compile_context>

<pallas_src>
import functools
import math

import jax
import jax.numpy as jnp
from jax.experimental import pallas as pl
from jax.experimental.pallas import tpu as pltpu

NET_SCALE = 2
NEG_SLOPE = 0.01  # nn.LeakyReLU default negative_slope


def _round_up(x, m):
    return ((x + m - 1) // m) * m


def _leaky_relu(x):
    return jnp.where(x > 0, x, NEG_SLOPE * x)


def dense_nn_kernel(x_ref,
                    w1, b1, w2, b2, w3, b3, w4, b4, w5, b5, w6, b6, w7, b7,
                    o_ref):
    """Fused MLP: 6x (Linear + LeakyReLU) + final Linear.

    Weights arrive as bf16; activations are cast to bf16 only at the MXU
    input, accumulation and all elementwise work stay in f32.
    """
    h = x_ref[...].astype(jnp.float32)

    def linear(h, w_ref, b_ref):
        acc = jnp.dot(h.astype(jnp.bfloat16), w_ref[...],
                      preferred_element_type=jnp.float32)
        return acc + b_ref[...]  # (1, N) f32 bias, broadcast along rows once

    h = _leaky_relu(linear(h, w1, b1))
    h = _leaky_relu(linear(h, w2, b2))
    h = _leaky_relu(linear(h, w3, b3))
    h = _leaky_relu(linear(h, w4, b4))
    h = _leaky_relu(linear(h, w5, b5))
    h = _leaky_relu(linear(h, w6, b6))
    h = linear(h, w7, b7)  # last layer has no activation

    o_ref[...] = h.astype(o_ref.dtype)


def init_params(key, in_channels, out_channels, dtype=jnp.float32):
    """Deterministic synthetic parameters matching the PyTorch layer shapes."""
    dims = [
        in_channels,
        200 * NET_SCALE,  # 400
        200 * NET_SCALE,
        200 * NET_SCALE,
        200 * NET_SCALE,
        100 * NET_SCALE,  # 200
        50 * NET_SCALE,   # 100
        out_channels,
    ]
    params = []
    for i in range(7):
        key, kw, kb = jax.random.split(key, 3)
        bound = 1.0 / math.sqrt(dims[i])
        w = jax.random.uniform(kw, (dims[i], dims[i + 1]), dtype, -bound, bound)
        b = jax.random.uniform(kb, (1, dims[i + 1]), dtype, -bound, bound)
        params.append((w, b))
    return params


@functools.partial(jax.jit, static_argnames=("block_b",))
def dense_nn_forward(x, params, block_b=512):
    """x: [B, in_channels].  params: 7 tuples of (w: (in, out), b: (1, out))."""
    B, in_ch = x.shape
    out_ch = params[-1][0].shape[1]

    # Batch tile: multiple of 8 (sublane), capped at the rounded-up batch so a
    # tiny demo batch does not allocate an oversized block.  For realistic
    # per-pixel batches (B >= a few thousand) tile_b=512 keeps the MXU rows
    # full, fits v7x's 64 MiB VMEM, and yields >= 2 grid steps so the
    # "parallel" batch axis can shard across both v7x TensorCores.
    tile_b = min(_round_up(block_b, 8), _round_up(max(B, 1), 8))
    grid_b = pl.cdiv(B, tile_b)  # partial last block handled by Pallas masking

    # bf16 weights (halves VMEM/HBM footprint), f32 biases.
    flat_params = []
    param_specs = []
    flops = 0
    param_bytes = 0
    for w, b in params:
        wq = w.astype(jnp.bfloat16)
        bq = b.astype(jnp.float32)
        flat_params += [wq, bq]
        param_specs.append(pl.BlockSpec(wq.shape, lambda i: (0, 0)))
        param_specs.append(pl.BlockSpec(bq.shape, lambda i: (0, 0)))
        flops += 2 * B * w.shape[0] * w.shape[1]
        param_bytes += wq.size * 2 + bq.size * 4

    x_spec = pl.BlockSpec((tile_b, in_ch), lambda i: (i, 0))
    out_spec = pl.BlockSpec((tile_b, out_ch), lambda i: (i, 0))

    cost = pl.CostEstimate(
        flops=flops,
        transcendentals=0,
        bytes_accessed=(x.size * x.dtype.itemsize
                        + B * out_ch * jnp.dtype(x.dtype).itemsize
                        + param_bytes),
    )

    out = pl.pallas_call(
        dense_nn_kernel,
        out_shape=jax.ShapeDtypeStruct((B, out_ch), x.dtype),
        grid_spec=pltpu.PrefetchScalarGridSpec(
            num_scalar_prefetch=0,
            grid=(grid_b,),
            in_specs=[x_spec] + param_specs,
            out_specs=out_spec,
        ),
        compiler_params=pltpu.CompilerParams(
            dimension_semantics=("parallel",)),
        cost_estimate=cost,
    )(x, *flat_params)

    return out


def dense_nn_reference(x, params):
    """Pure-JAX reference mirroring the kernel's bf16-matmul / f32-accumulate."""
    h = x.astype(jnp.float32)
    for i, (w, b) in enumerate(params):
        h = jnp.dot(h.astype(jnp.bfloat16), w.astype(jnp.bfloat16),
                    preferred_element_type=jnp.float32) + b.astype(jnp.float32)
        if i < len(params) - 1:
            h = jnp.where(h > 0, h, NEG_SLOPE * h)
    return h.astype(x.dtype)


if __name__ == "__main__":
    key = jax.random.PRNGKey(0)
    k_param, k_x = jax.random.split(key)

    in_channels = 8   # e.g. number of T1-weighted signal samples per pixel
    out_channels = 4
    batch = 16

    params = init_params(k_param, in_channels, out_channels)
    x = jax.random.normal(k_x, (batch, in_channels), jnp.float32)

    y = dense_nn_forward(x, params)
    y = jax.block_until_ready(y)

    y_ref = dense_nn_reference(x, params)
    assert y.shape == (batch, out_channels), y.shape
    assert jnp.allclose(y, y_ref, atol=1e-2, rtol=1e-2), (
        float(jnp.max(jnp.abs(y - y_ref))))

    print("KERNEL_OK")
</pallas_src>

<mosaic_0001>
module attributes {stable_mosaic.version = 11 : i64} {
  func.func @dense_nn_kernel(%arg0: i32, %arg1: memref<16x8xf32, #tpu.memory_space<vmem>>, %arg2: memref<8x400xbf16, #tpu.memory_space<vmem>>, %arg3: memref<1x400xf32, #tpu.memory_space<vmem>>, %arg4: memref<400x400xbf16, #tpu.memory_space<vmem>>, %arg5: memref<1x400xf32, #tpu.memory_space<vmem>>, %arg6: memref<400x400xbf16, #tpu.memory_space<vmem>>, %arg7: memref<1x400xf32, #tpu.memory_space<vmem>>, %arg8: memref<400x400xbf16, #tpu.memory_space<vmem>>, %arg9: memref<1x400xf32, #tpu.memory_space<vmem>>, %arg10: memref<400x200xbf16, #tpu.memory_space<vmem>>, %arg11: memref<1x200xf32, #tpu.memory_space<vmem>>, %arg12: memref<200x100xbf16, #tpu.memory_space<vmem>>, %arg13: memref<1x100xf32, #tpu.memory_space<vmem>>, %arg14: memref<100x4xbf16, #tpu.memory_space<vmem>>, %arg15: memref<1x4xf32, #tpu.memory_space<vmem>>, %arg16: memref<16x4xf32, #tpu.memory_space<vmem>>) attributes {dimension_semantics = [#tpu.dimension_semantics<parallel>], iteration_bounds = array<i64: 1>, scalar_prefetch = 0 : i64, scratch_operands = 0 : i64, tpu.core_type = #tpu.core_type<tc>, window_params = [{transform_indices = @transform_0, window_bounds = array<i64: 16, 8>}, {pipeline_mode = #tpu.pipeline_mode<synchronous>, transform_indices = @transform_1, window_bounds = array<i64: 8, 400>}, {pipeline_mode = #tpu.pipeline_mode<synchronous>, transform_indices = @transform_2, window_bounds = array<i64: 1, 400>}, {pipeline_mode = #tpu.pipeline_mode<synchronous>, transform_indices = @transform_3, window_bounds = array<i64: 400, 400>}, {pipeline_mode = #tpu.pipeline_mode<synchronous>, transform_indices = @transform_4, window_bounds = array<i64: 1, 400>}, {pipeline_mode = #tpu.pipeline_mode<synchronous>, transform_indices = @transform_5, window_bounds = array<i64: 400, 400>}, {pipeline_mode = #tpu.pipeline_mode<synchronous>, transform_indices = @transform_6, window_bounds = array<i64: 1, 400>}, {pipeline_mode = #tpu.pipeline_mode<synchronous>, transform_indices = @transform_7, window_bounds = array<i64: 400, 400>}, {pipeline_mode = #tpu.pipeline_mode<synchronous>, transform_indices = @transform_8, window_bounds = array<i64: 1, 400>}, {pipeline_mode = #tpu.pipeline_mode<synchronous>, transform_indices = @transform_9, window_bounds = array<i64: 400, 200>}, {pipeline_mode = #tpu.pipeline_mode<synchronous>, transform_indices = @transform_10, window_bounds = array<i64: 1, 200>}, {pipeline_mode = #tpu.pipeline_mode<synchronous>, transform_indices = @transform_11, window_bounds = array<i64: 200, 100>}, {pipeline_mode = #tpu.pipeline_mode<synchronous>, transform_indices = @transform_12, window_bounds = array<i64: 1, 100>}, {pipeline_mode = #tpu.pipeline_mode<synchronous>, transform_indices = @transform_13, window_bounds = array<i64: 100, 4>}, {pipeline_mode = #tpu.pipeline_mode<synchronous>, transform_indices = @transform_14, window_bounds = array<i64: 1, 4>}, {transform_indices = @transform_15, window_bounds = array<i64: 16, 4>}]} {
    %c0 = arith.constant 0 : index
    %c0_0 = arith.constant 0 : index
    %0 = vector.load %arg1[%c0, %c0_0] : memref<16x8xf32, #tpu.memory_space<vmem>>, vector<16x8xf32>
    %1 = arith.truncf %0 : vector<16x8xf32> to vector<16x8xbf16>
    %c0_1 = arith.constant 0 : index
    %c0_2 = arith.constant 0 : index
    %2 = vector.load %arg2[%c0_1, %c0_2] : memref<8x400xbf16, #tpu.memory_space<vmem>>, vector<8x400xbf16>
    %cst = arith.constant dense<0.000000e+00> : vector<16x400xf32>
    %3 = tpu.matmul %1, %2, %cst {dimension_numbers = #tpu.dot_dimension_numbers<[1], [0], [0], [1], [0, 0, 1, 1], [], []>} : vector<16x8xbf16>, vector<8x400xbf16>, vector<16x400xf32> -> vector<16x400xf32>
    %c0_3 = arith.constant 0 : index
    %c0_4 = arith.constant 0 : index
    %4 = vector.load %arg3[%c0_3, %c0_4] : memref<1x400xf32, #tpu.memory_space<vmem>>, vector<1x400xf32>
    %5 = vector.broadcast %4 : vector<1x400xf32> to vector<16x400xf32>
    %6 = arith.addf %3, %5 : vector<16x400xf32>
    %cst_5 = arith.constant 0.000000e+00 : f32
    %7 = vector.broadcast %cst_5 : f32 to vector<16x400xf32>
    %8 = arith.cmpf ogt, %6, %7 : vector<16x400xf32>
    %cst_6 = arith.constant 0.00999999977 : f32
    %9 = vector.broadcast %cst_6 : f32 to vector<16x400xf32>
    %10 = arith.mulf %9, %6 : vector<16x400xf32>
    %11 = arith.select %8, %6, %10 : vector<16x400xi1>, vector<16x400xf32>
    %12 = arith.truncf %11 : vector<16x400xf32> to vector<16x400xbf16>
    %c0_7 = arith.constant 0 : index
    %c0_8 = arith.constant 0 : index
    %13 = vector.load %arg4[%c0_7, %c0_8] : memref<400x400xbf16, #tpu.memory_space<vmem>>, vector<400x400xbf16>
    %cst_9 = arith.constant dense<0.000000e+00> : vector<16x400xf32>
    %14 = tpu.matmul %12, %13, %cst_9 {dimension_numbers = #tpu.dot_dimension_numbers<[1], [0], [0], [1], [0, 0, 1, 1], [], []>} : vector<16x400xbf16>, vector<400x400xbf16>, vector<16x400xf32> -> vector<16x400xf32>
    %c0_10 = arith.constant 0 : index
    %c0_11 = arith.constant 0 : index
    %15 = vector.load %arg5[%c0_10, %c0_11] : memref<1x400xf32, #tpu.memory_space<vmem>>, vector<1x400xf32>
    %16 = vector.broadcast %15 : vector<1x400xf32> to vector<16x400xf32>
    %17 = arith.addf %14, %16 : vector<16x400xf32>
    %cst_12 = arith.constant 0.000000e+00 : f32
    %18 = vector.broadcast %cst_12 : f32 to vector<16x400xf32>
    %19 = arith.cmpf ogt, %17, %18 : vector<16x400xf32>
    %cst_13 = arith.constant 0.00999999977 : f32
    %20 = vector.broadcast %cst_13 : f32 to vector<16x400xf32>
    %21 = arith.mulf %20, %17 : vector<16x400xf32>
    %22 = arith.select %19, %17, %21 : vector<16x400xi1>, vector<16x400xf32>
    %23 = arith.truncf %22 : vector<16x400xf32> to vector<16x400xbf16>
    %c0_14 = arith.constant 0 : index
    %c0_15 = arith.constant 0 : index
    %24 = vector.load %arg6[%c0_14, %c0_15] : memref<400x400xbf16, #tpu.memory_space<vmem>>, vector<400x400xbf16>
    %cst_16 = arith.constant dense<0.000000e+00> : vector<16x400xf32>
    %25 = tpu.matmul %23, %24, %cst_16 {dimension_numbers = #tpu.dot_dimension_numbers<[1], [0], [0], [1], [0, 0, 1, 1], [], []>} : vector<16x400xbf16>, vector<400x400xbf16>, vector<16x400xf32> -> vector<16x400xf32>
    %c0_17 = arith.constant 0 : index
    %c0_18 = arith.constant 0 : index
    %26 = vector.load %arg7[%c0_17, %c0_18] : memref<1x400xf32, #tpu.memory_space<vmem>>, vector<1x400xf32>
    %27 = vector.broadcast %26 : vector<1x400xf32> to vector<16x400xf32>
    %28 = arith.addf %25, %27 : vector<16x400xf32>
    %cst_19 = arith.constant 0.000000e+00 : f32
    %29 = vector.broadcast %cst_19 : f32 to vector<16x400xf32>
    %30 = arith.cmpf ogt, %28, %29 : vector<16x400xf32>
    %cst_20 = arith.constant 0.00999999977 : f32
    %31 = vector.broadcast %cst_20 : f32 to vector<16x400xf32>
    %32 = arith.mulf %31, %28 : vector<16x400xf32>
    %33 = arith.select %30, %28, %32 : vector<16x400xi1>, vector<16x400xf32>
    %34 = arith.truncf %33 : vector<16x400xf32> to vector<16x400xbf16>
    %c0_21 = arith.constant 0 : index
    %c0_22 = arith.constant 0 : index
    %35 = vector.load %arg8[%c0_21, %c0_22] : memref<400x400xbf16, #tpu.memory_space<vmem>>, vector<400x400xbf16>
    %cst_23 = arith.constant dense<0.000000e+00> : vector<16x400xf32>
    %36 = tpu.matmul %34, %35, %cst_23 {dimension_numbers = #tpu.dot_dimension_numbers<[1], [0], [0], [1], [0, 0, 1, 1], [], []>} : vector<16x400xbf16>, vector<400x400xbf16>, vector<16x400xf32> -> vector<16x400xf32>
    %c0_24 = arith.constant 0 : index
    %c0_25 = arith.constant 0 : index
    %37 = vector.load %arg9[%c0_24, %c0_25] : memref<1x400xf32, #tpu.memory_space<vmem>>, vector<1x400xf32>
    %38 = vector.broadcast %37 : vector<1x400xf32> to vector<16x400xf32>
    %39 = arith.addf %36, %38 : vector<16x400xf32>
    %cst_26 = arith.constant 0.000000e+00 : f32
    %40 = vector.broadcast %cst_26 : f32 to vector<16x400xf32>
    %41 = arith.cmpf ogt, %39, %40 : vector<16x400xf32>
    %cst_27 = arith.constant 0.00999999977 : f32
    %42 = vector.broadcast %cst_27 : f32 to vector<16x400xf32>
    %43 = arith.mulf %42, %39 : vector<16x400xf32>
    %44 = arith.select %41, %39, %43 : vector<16x400xi1>, vector<16x400xf32>
    %45 = arith.truncf %44 : vector<16x400xf32> to vector<16x400xbf16>
    %c0_28 = arith.constant 0 : index
    %c0_29 = arith.constant 0 : index
    %46 = vector.load %arg10[%c0_28, %c0_29] : memref<400x200xbf16, #tpu.memory_space<vmem>>, vector<400x200xbf16>
    %cst_30 = arith.constant dense<0.000000e+00> : vector<16x200xf32>
    %47 = tpu.matmul %45, %46, %cst_30 {dimension_numbers = #tpu.dot_dimension_numbers<[1], [0], [0], [1], [0, 0, 1, 1], [], []>} : vector<16x400xbf16>, vector<400x200xbf16>, vector<16x200xf32> -> vector<16x200xf32>
    %c0_31 = arith.constant 0 : index
    %c0_32 = arith.constant 0 : index
    %48 = vector.load %arg11[%c0_31, %c0_32] : memref<1x200xf32, #tpu.memory_space<vmem>>, vector<1x200xf32>
    %49 = vector.broadcast %48 : vector<1x200xf32> to vector<16x200xf32>
    %50 = arith.addf %47, %49 : vector<16x200xf32>
    %cst_33 = arith.constant 0.000000e+00 : f32
    %51 = vector.broadcast %cst_33 : f32 to vector<16x200xf32>
    %52 = arith.cmpf ogt, %50, %51 : vector<16x200xf32>
    %cst_34 = arith.constant 0.00999999977 : f32
    %53 = vector.broadcast %cst_34 : f32 to vector<16x200xf32>
    %54 = arith.mulf %53, %50 : vector<16x200xf32>
    %55 = arith.select %52, %50, %54 : vector<16x200xi1>, vector<16x200xf32>
    %56 = arith.truncf %55 : vector<16x200xf32> to vector<16x200xbf16>
    %c0_35 = arith.constant 0 : index
    %c0_36 = arith.constant 0 : index
    %57 = vector.load %arg12[%c0_35, %c0_36] : memref<200x100xbf16, #tpu.memory_space<vmem>>, vector<200x100xbf16>
    %cst_37 = arith.constant dense<0.000000e+00> : vector<16x100xf32>
    %58 = tpu.matmul %56, %57, %cst_37 {dimension_numbers = #tpu.dot_dimension_numbers<[1], [0], [0], [1], [0, 0, 1, 1], [], []>} : vector<16x200xbf16>, vector<200x100xbf16>, vector<16x100xf32> -> vector<16x100xf32>
    %c0_38 = arith.constant 0 : index
    %c0_39 = arith.constant 0 : index
    %59 = vector.load %arg13[%c0_38, %c0_39] : memref<1x100xf32, #tpu.memory_space<vmem>>, vector<1x100xf32>
    %60 = vector.broadcast %59 : vector<1x100xf32> to vector<16x100xf32>
    %61 = arith.addf %58, %60 : vector<16x100xf32>
    %cst_40 = arith.constant 0.000000e+00 : f32
    %62 = vector.broadcast %cst_40 : f32 to vector<16x100xf32>
    %63 = arith.cmpf ogt, %61, %62 : vector<16x100xf32>
    %cst_41 = arith.constant 0.00999999977 : f32
    %64 = vector.broadcast %cst_41 : f32 to vector<16x100xf32>
    %65 = arith.mulf %64, %61 : vector<16x100xf32>
    %66 = arith.select %63, %61, %65 : vector<16x100xi1>, vector<16x100xf32>
    %67 = arith.truncf %66 : vector<16x100xf32> to vector<16x100xbf16>
    %c0_42 = arith.constant 0 : index
    %c0_43 = arith.constant 0 : index
    %68 = vector.load %arg14[%c0_42, %c0_43] : memref<100x4xbf16, #tpu.memory_space<vmem>>, vector<100x4xbf16>
    %cst_44 = arith.constant dense<0.000000e+00> : vector<16x4xf32>
    %69 = tpu.matmul %67, %68, %cst_44 {dimension_numbers = #tpu.dot_dimension_numbers<[1], [0], [0], [1], [0, 0, 1, 1], [], []>} : vector<16x100xbf16>, vector<100x4xbf16>, vector<16x4xf32> -> vector<16x4xf32>
    %c0_45 = arith.constant 0 : index
    %c0_46 = arith.constant 0 : index
    %70 = vector.load %arg15[%c0_45, %c0_46] : memref<1x4xf32, #tpu.memory_space<vmem>>, vector<1x4xf32>
    %71 = vector.broadcast %70 : vector<1x4xf32> to vector<16x4xf32>
    %72 = arith.addf %69, %71 : vector<16x4xf32>
    %c0_47 = arith.constant 0 : index
    %c0_48 = arith.constant 0 : index
    %73 = vector.load %arg16[%c0_47, %c0_48] : memref<16x4xf32, #tpu.memory_space<vmem>>, vector<16x4xf32>
    tpu.vector_store %arg16[%c0_47, %c0_48], %72 {strides = array<i32>} : memref<16x4xf32, #tpu.memory_space<vmem>>, vector<16x4xf32>,
    return
  }
  func.func @transform_0(%arg0: i32) -> (i32, i32) {
    %c0_i32 = arith.constant 0 : i32
    %c0_i32_0 = arith.constant 0 : i32
    return %arg0, %c0_i32 : i32, i32
  }
  func.func @transform_1(%arg0: i32) -> (i32, i32) {
    %c0_i32 = arith.constant 0 : i32
    %c0_i32_0 = arith.constant 0 : i32
    %c0_i32_1 = arith.constant 0 : i32
    return %c0_i32, %c0_i32_0 : i32, i32
  }
  func.func @transform_2(%arg0: i32) -> (i32, i32) {
    %c0_i32 = arith.constant 0 : i32
    %c0_i32_0 = arith.constant 0 : i32
    %c0_i32_1 = arith.constant 0 : i32
    return %c0_i32, %c0_i32_0 : i32, i32
  }
  func.func @transform_3(%arg0: i32) -> (i32, i32) {
    %c0_i32 = arith.constant 0 : i32
    %c0_i32_0 = arith.constant 0 : i32
    %c0_i32_1 = arith.constant 0 : i32
    return %c0_i32, %c0_i32_0 : i32, i32
  }
  func.func @transform_4(%arg0: i32) -> (i32, i32) {
    %c0_i32 = arith.constant 0 : i32
    %c0_i32_0 = arith.constant 0 : i32
    %c0_i32_1 = arith.constant 0 : i32
    return %c0_i32, %c0_i32_0 : i32, i32
  }
  func.func @transform_5(%arg0: i32) -> (i32, i32) {
    %c0_i32 = arith.constant 0 : i32
    %c0_i32_0 = arith.constant 0 : i32
    %c0_i32_1 = arith.constant 0 : i32
    return %c0_i32, %c0_i32_0 : i32, i32
  }
  func.func @transform_6(%arg0: i32) -> (i32, i32) {
    %c0_i32 = arith.constant 0 : i32
    %c0_i32_0 = arith.constant 0 : i32
    %c0_i32_1 = arith.constant 0 : i32
    return %c0_i32, %c0_i32_0 : i32, i32
  }
  func.func @transform_7(%arg0: i32) -> (i32, i32) {
    %c0_i32 = arith.constant 0 : i32
    %c0_i32_0 = arith.constant 0 : i32
    %c0_i32_1 = arith.constant 0 : i32
    return %c0_i32, %c0_i32_0 : i32, i32
  }
  func.func @transform_8(%arg0: i32) -> (i32, i32) {
    %c0_i32 = arith.constant 0 : i32
    %c0_i32_0 = arith.constant 0 : i32
    %c0_i32_1 = arith.constant 0 : i32
    return %c0_i32, %c0_i32_0 : i32, i32
  }
  func.func @transform_9(%arg0: i32) -> (i32, i32) {
    %c0_i32 = arith.constant 0 : i32
    %c0_i32_0 = arith.constant 0 : i32
    %c0_i32_1 = arith.constant 0 : i32
    return %c0_i32, %c0_i32_0 : i32, i32
  }
  func.func @transform_10(%arg0: i32) -> (i32, i32) {
    %c0_i32 = arith.constant 0 : i32
    %c0_i32_0 = arith.constant 0 : i32
    %c0_i32_1 = arith.constant 0 : i32
    return %c0_i32, %c0_i32_0 : i32, i32
  }
  func.func @transform_11(%arg0: i32) -> (i32, i32) {
    %c0_i32 = arith.constant 0 : i32
    %c0_i32_0 = arith.constant 0 : i32
    %c0_i32_1 = arith.constant 0 : i32
    return %c0_i32, %c0_i32_0 : i32, i32
  }
  func.func @transform_12(%arg0: i32) -> (i32, i32) {
    %c0_i32 = arith.constant 0 : i32
    %c0_i32_0 = arith.constant 0 : i32
    %c0_i32_1 = arith.constant 0 : i32
    return %c0_i32, %c0_i32_0 : i32, i32
  }
  func.func @transform_13(%arg0: i32) -> (i32, i32) {
    %c0_i32 = arith.constant 0 : i32
    %c0_i32_0 = arith.constant 0 : i32
    %c0_i32_1 = arith.constant 0 : i32
    return %c0_i32, %c0_i32_0 : i32, i32
  }
  func.func @transform_14(%arg0: i32) -> (i32, i32) {
    %c0_i32 = arith.constant 0 : i32
    %c0_i32_0 = arith.constant 0 : i32
    %c0_i32_1 = arith.constant 0 : i32
    return %c0_i32, %c0_i32_0 : i32, i32
  }
  func.func @transform_15(%arg0: i32) -> (i32, i32) {
    %c0_i32 = arith.constant 0 : i32
    %c0_i32_0 = arith.constant 0 : i32
    return %arg0, %c0_i32 : i32, i32
  }
}

</mosaic_0001>

<bundles_post_ra>
// kernel: dense_nn_forward.1
= control target key start
LH: loop header
LB: loop body
LE: loop exit
PB: predicated region body
PF: predicated region fallthrough
CT: control target
= control target key end

     0   :  { %vm92_vm0 = vcmask 1043456   ;;  %v4410_v2 = vmov 0   ;;  %vm88_vm1 = vcmask 64512   ;;  %vm841_vm10 = vcmask 130048   ;;  %s5715_s1 = inlined_call_operand.vmem [shape: bf16[8,400], index: 1, kind: input, shape index: {}]   ;;  %s5716_s0 = inlined_call_operand.vmem [shape: f32[16,8], index: 0, kind: input, shape index: {}]   ;;  %s5717_s3 = inlined_call_operand.vmem [shape: bf16[400,400], index: 3, kind: input, shape index: {}]   ;;  %s5718_s5 = inlined_call_operand.vmem [shape: bf16[400,400], index: 5, kind: input, shape index: {}]   ;;  %s5719_s2 = inlined_call_operand.vmem [shape: f32[1,400], index: 2, kind: input, shape index: {}]   ;;  %s5720_s7 = inlined_call_operand.vmem [shape: bf16[400,400], index: 7, kind: input, shape index: {}]   ;;  %s5721_s4 = inlined_call_operand.vmem [shape: f32[1,400], index: 4, kind: input, shape index: {}]   ;;  %s5722_s9 = inlined_call_operand.vmem [shape: bf16[400,200], index: 9, kind: input, shape index: {}]   ;;  %s5723_s6 = inlined_call_operand.vmem [shape: f32[1,400], index: 6, kind: input, shape index: {}]   ;;  %s5724_s11 = inlined_call_operand.vmem [shape: bf16[200,100], index: 11, kind: input, shape index: {}]   ;;  %s5725_s8 = inlined_call_operand.vmem [shape: f32[1,400], index: 8, kind: input, shape index: {}]   ;;  %s5726_s13 = inlined_call_operand.vmem [shape: bf16[100,4], index: 13, kind: input, shape index: {}]   ;;  %s5727_s10 = inlined_call_operand.vmem [shape: f32[1,200], index: 10, kind: input, shape index: {}]   ;;  %s5728_s12 = inlined_call_operand.vmem [shape: f32[1,100], index: 12, kind: input, shape index: {}]   ;;  %s5729_s14 = inlined_call_operand.vmem [shape: f32[1,4], index: 14, kind: input, shape index: {}]   ;;  %s5730_s15 = inlined_call_operand.vmem [shape: f32[16,4], index: 15, kind: output, shape index: {}]  }
   0x1   :  { %v54_v0 = vld [vmem:[%s5715_s1] sm:$0xff]  ;;  %v55_v1 = vld [vmem:[%s5715_s1 + $0x8] sm:$0xff]  ;;  %137 = vmatprep.mubr.bf16.mxu1 %v4410_v2 }
   0x2   :  { %v51_v3 = vld [vmem:[%s5716_s0] sm:$0xff]  ;;  %v3388_v4 = vcombine.high %v54_v0, %v54_v0  ;;  %v3390_v5 = vcombine.high %v55_v1, %v55_v1  ;;  %v3387_v6 = vcombine.low %v54_v0, %v54_v0  ;;  %v52_v7 = vld [vmem:[%s5716_s0 + $0x8] sm:$0xff]  ;;  %v3389_v8 = vcombine.low %v55_v1, %v55_v1 }
   0x3   :  { %v3865_v9 = vld [vmem:[%s5717_s3 + $0x4] ss:$16 sps:$4 sm:$0xff]   ;;  %v53_v11 = vpack.c.bf16 %v52_v7, %v51_v3  ;;  %v3869_v12 = vld [vmem:[%s5717_s3 + $0xc] ss:$16 sps:$4 sm:$0xff]   ;;  %v3870_v13 = vld [vmem:[%s5717_s3] ss:$16 sps:$4 sm:$0xff]  }
   0x4   :  { %3391 = vmatprep.subr.msk.bf16.mxu1 %vm92_vm0, %v3388_v4  ;;  %v94_v10 = vsel %vm92_vm0, %v3387_v6, 0  ;;  %845 = vmatprep.subr.bf16.mxu0 %v3865_v9  ;;  %v100_v14 = vsel %vm92_vm0, %v3389_v8, 0  ;;  %v3871_v15 = vld [vmem:[%s5717_s3 + $0x24] ss:$16 sps:$4 sm:$0xff]   ;;  %v3876_v16 = vld [vmem:[%s5717_s3 + $0x20] ss:$16 sps:$4 sm:$0xff]  }
   0x5   :  { %106 = vmatpush1.bf16.msra.mxu1 %v94_v10  ;;  %846 = vmatpush1.bf16.msra.mxu0 %v3870_v13  ;;  %v3877_v17 = vld [vmem:[%s5717_s3 + $0x44] ss:$16 sps:$4 sm:$0xff]   ;;  %v3882_v18 = vld [vmem:[%s5717_s3 + $0x40] ss:$16 sps:$4 sm:$0xff]   ;;  %v3867_v20 = vld [vmem:[%s5717_s3 + $0x8] ss:$16 sps:$4 sm:$0xff]  }
   0x6   :  { %3393 = vmatprep.subr.msk.bf16.mxu1 %vm92_vm0, %v3390_v5  ;;  %847 = vmatprep.subr.bf16.mxu0 %v3871_v15  ;;  %v3883_v19 = vld [vmem:[%s5717_s3 + $0x64] ss:$16 sps:$4 sm:$0xff]   ;;  %v3875_v21 = vld [vmem:[%s5717_s3 + $0x2c] ss:$16 sps:$4 sm:$0xff]   ;;  %v3888_v22 = vld [vmem:[%s5717_s3 + $0x60] ss:$16 sps:$4 sm:$0xff]   ;;  %v58_v15 = vlaneseq }
   0x7   :  { %v3889_v23 = vld [vmem:[%s5717_s3 + $0x84] ss:$16 sps:$4 sm:$0xff]   ;;  %v3873_v24 = vld [vmem:[%s5717_s3 + $0x28] ss:$16 sps:$4 sm:$0xff]   ;;  %v3881_v25 = vld [vmem:[%s5717_s3 + $0x4c] ss:$16 sps:$4 sm:$0xff]  }
   0x8   :  { %3392 = vmatmul.mubr.msk.bf16.vlgmr.msra.gmra.mrb[0].mxu1 %vm88_vm1, %v53_v11  ;;  %v3894_v26 = vld [vmem:[%s5717_s3 + $0x80] ss:$16 sps:$4 sm:$0xff]   ;;  %v3895_v27 = vld [vmem:[%s5717_s3 + $0xa4] ss:$16 sps:$4 sm:$0xff]   ;;  %v3879_v28 = vld [vmem:[%s5717_s3 + $0x48] ss:$16 sps:$4 sm:$0xff]  }
   0x9   :  { %149 = vmatpush1.bf16.msra.mxu1 %v100_v14  ;;  %180 = vmatprep.mubr.bf16.mxu1 %v4410_v2  ;;  %v3887_v29 = vld [vmem:[%s5717_s3 + $0x6c] ss:$16 sps:$4 sm:$0xff]   ;;  %v3900_v30 = vld [vmem:[%s5717_s3 + $0xa0] ss:$16 sps:$4 sm:$0xff]   ;;  %v3901_v31 = vld [vmem:[%s5717_s3 + $0xc4] ss:$16 sps:$4 sm:$0xff]  }
   0xa   :  { %931 = vmatprep.subr.bf16.mxu1 %v3869_v12  ;;  %848 = vmatpush1.bf16.msra.mxu0 %v3876_v16  ;;  %v3885_v32 = vld [vmem:[%s5717_s3 + $0x68] ss:$16 sps:$4 sm:$0xff]   ;;  %v3893_v33 = vld [vmem:[%s5717_s3 + $0x8c] ss:$16 sps:$4 sm:$0xff]   ;;  %v3906_v34 = vld [vmem:[%s5717_s3 + $0xc0] ss:$16 sps:$4 sm:$0xff]  }
   0xb   :  { %849 = vmatprep.subr.bf16.mxu0 %v3877_v17  ;;  %v3907_v35 = vld [vmem:[%s5717_s3 + $0xe4] ss:$16 sps:$4 sm:$0xff]   ;;  %v3891_v36 = vld [vmem:[%s5717_s3 + $0x88] ss:$16 sps:$4 sm:$0xff]   ;;  %v3899_v37 = vld [vmem:[%s5717_s3 + $0xac] ss:$16 sps:$4 sm:$0xff]  }
   0xc   :  { %v3912_v38 = vld [vmem:[%s5717_s3 + $0xe0] ss:$16 sps:$4 sm:$0xff]   ;;  %v3913_v39 = vld [vmem:[%s5717_s3 + $0x104] ss:$16 sps:$4 sm:$0xff]   ;;  %v3897_v40 = vld [vmem:[%s5717_s3 + $0xa8] ss:$16 sps:$4 sm:$0xff]  }
   0xd   :  { %v3905_v41 = vld [vmem:[%s5717_s3 + $0xcc] ss:$16 sps:$4 sm:$0xff]   ;;  %v3918_v42 = vld [vmem:[%s5717_s3 + $0x100] ss:$16 sps:$4 sm:$0xff]   ;;  %v3919_v43 = vld [vmem:[%s5717_s3 + $0x124] ss:$16 sps:$4 sm:$0xff]  }
   0xe   :  { %850 = vmatpush1.bf16.msra.mxu0 %v3882_v18  ;;  %v3903_v44 = vld [vmem:[%s5717_s3 + $0xc8] ss:$16 sps:$4 sm:$0xff]   ;;  %v3911_v45 = vld [vmem:[%s5717_s3 + $0xec] ss:$16 sps:$4 sm:$0xff]   ;;  %v3924_v47 = vld [vmem:[%s5717_s3 + $0x120] ss:$16 sps:$4 sm:$0xff]  }
   0xf   :  { %851 = vmatprep.subr.bf16.mxu0 %v3883_v19  ;;  %v3909_v46 = vld [vmem:[%s5717_s3 + $0xe8] ss:$16 sps:$4 sm:$0xff]   ;;  %v3925_v48 = vld [vmem:[%s5717_s3 + $0x144] ss:$16 sps:$4 sm:$0xff]   ;;  %v3917_v49 = vld [vmem:[%s5717_s3 + $0x10c] ss:$16 sps:$4 sm:$0xff]  }
  0x10   :  { %3394 = vmatmul.mubr.msk.bf16.vlgmr.msra.gmra.mrb[4].mxu1 %vm88_vm1, %v53_v11  ;;  %v3930_v50 = vld [vmem:[%s5717_s3 + $0x140] ss:$16 sps:$4 sm:$0xff]   ;;  %v3931_v51 = vld [vmem:[%s5717_s3 + $0x164] ss:$16 sps:$4 sm:$0xff]   ;;  %v3915_v52 = vld [vmem:[%s5717_s3 + $0x108] ss:$16 sps:$4 sm:$0xff]  }
  0x11   :  { %932 = vmatpush1.bf16.msra.mxu1 %v3867_v20  ;;  %v3923_v53 = vld [vmem:[%s5717_s3 + $0x12c] ss:$16 sps:$4 sm:$0xff]   ;;  %v3936_v54 = vld [vmem:[%s5717_s3 + $0x160] ss:$16 sps:$4 sm:$0xff]   ;;  %v3937_v55 = vld [vmem:[%s5717_s3 + $0x184] ss:$16 sps:$4 sm:$0xff]  }
  0x12   :  { %933 = vmatprep.subr.bf16.mxu1 %v3875_v21  ;;  %852 = vmatpush1.bf16.msra.mxu0 %v3888_v22  ;;  %v3921_v56 = vld [vmem:[%s5717_s3 + $0x128] ss:$16 sps:$4 sm:$0xff]   ;;  %v3929_v57 = vld [vmem:[%s5717_s3 + $0x14c] ss:$16 sps:$4 sm:$0xff]   ;;  %v3942_v58 = vld [vmem:[%s5717_s3 + $0x180] ss:$16 sps:$4 sm:$0xff]  }
  0x13   :  { %853 = vmatprep.subr.bf16.mxu0 %v3889_v23  ;;  %v3943_v59 = vld [vmem:[%s5717_s3 + $0x1a4] ss:$16 sps:$4 sm:$0xff]   ;;  %v3927_v60 = vld [vmem:[%s5717_s3 + $0x148] ss:$16 sps:$4 sm:$0xff]   ;;  %v3935_v61 = vld [vmem:[%s5717_s3 + $0x16c] ss:$16 sps:$4 sm:$0xff]  }
  0x14   :  { %v3933_v62 = vld [vmem:[%s5717_s3 + $0x168] ss:$16 sps:$4 sm:$0xff]   ;;  %v3941_v63 = vld [vmem:[%s5717_s3 + $0x18c] ss:$16 sps:$4 sm:$0xff]   ;;  %v3948_v4 = vld [vmem:[%s5717_s3 + $0x1a0] ss:$16 sps:$4 sm:$0xff]  }
  0x15   :  { %934 = vmatpush1.bf16.msra.mxu1 %v3873_v24  ;;  %v3939_v0 = vld [vmem:[%s5717_s3 + $0x188] ss:$16 sps:$4 sm:$0xff]   ;;  %v3947_v1 = vld [vmem:[%s5717_s3 + $0x1ac] ss:$16 sps:$4 sm:$0xff]   ;;  %v3949_v5 = vld [vmem:[%s5717_s3 + $0x1c4] ss:$16 sps:$4 sm:$0xff]  }
  0x16   :  { %935 = vmatprep.subr.bf16.mxu1 %v3881_v25  ;;  %854 = vmatpush1.bf16.msra.mxu0 %v3894_v26  ;;  %v3945_v3 = vld [vmem:[%s5717_s3 + $0x1a8] ss:$16 sps:$4 sm:$0xff]   ;;  %v3953_v6 = vld [vmem:[%s5717_s3 + $0x1cc] ss:$16 sps:$4 sm:$0xff]   ;;  %v3954_v8 = vld [vmem:[%s5717_s3 + $0x1c0] ss:$16 sps:$4 sm:$0xff]  }
  0x17   :  { %855 = vmatprep.subr.bf16.mxu0 %v3895_v27  ;;  %v3951_v7 = vld [vmem:[%s5717_s3 + $0x1c8] ss:$16 sps:$4 sm:$0xff]   ;;  %v3955_v9 = vld [vmem:[%s5717_s3 + $0x1e4] ss:$16 sps:$4 sm:$0xff]   ;;  %v3959_v10 = vld [vmem:[%s5717_s3 + $0x1ec] ss:$16 sps:$4 sm:$0xff]  }
  0x18   :  { %v3957_v11 = vld [vmem:[%s5717_s3 + $0x1e8] ss:$16 sps:$4 sm:$0xff]   ;;  %v3960_v12 = vld [vmem:[%s5717_s3 + $0x1e0] ss:$16 sps:$4 sm:$0xff]   ;;  %v3963_v13 = vld [vmem:[%s5717_s3 + $0x204] ss:$16 sps:$4 sm:$0xff]  }
  0x19   :  { %936 = vmatpush1.bf16.msra.mxu1 %v3879_v28  ;;  %v3966_v14 = vld [vmem:[%s5717_s3 + $0x20c] ss:$16 sps:$4 sm:$0xff]   ;;  %v59_v16 = vshrl.u32 %v58_v15, 7  ;;  %v56_v18 = vld [vmem:[%s5719_s2] sm:$0xf] }
  0x1a   :  { %937 = vmatprep.subr.bf16.mxu1 %v3887_v29  ;;  %856 = vmatpush1.bf16.msra.mxu0 %v3900_v30  ;;  %v3985_v15 = vld [vmem:[%s5717_s3 + $0x280] ss:$16 sps:$4 sm:$0xff]  }
  0x1b   :  { %857 = vmatprep.subr.bf16.mxu0 %v3901_v31  ;;  %v4711_v17 = vsub.s32 0, %v59_v16  ;;  %v4716_v19 = vsub.s32 1, %v59_v16  ;;  %v4720_v25 = vsub.s32 2, %v59_v16  ;;  %v4722_v28 = vsub.s32 3, %v59_v16  ;;  %v3988_v16 = vld [vmem:[%s5717_s3 + $0x288] ss:$16 sps:$4 sm:$0xff]  }
  0x1d   :  { %938 = vmatpush1.bf16.msra.mxu1 %v3885_v32  ;;  %v61_v20 = vrot.slane %v56_v18, %v4711_v17  ;;  %v65_v21 = vrot.slane %v56_v18, %v4716_v19 }
  0x1e   :  { %939 = vmatprep.subr.bf16.mxu1 %v3893_v33  ;;  %858 = vmatpush1.bf16.msra.mxu0 %v3906_v34 }
  0x1f   :  { %859 = vmatprep.subr.bf16.mxu0 %v3907_v35  ;;  %v69_v35 = vrot.slane %v56_v18, %v4720_v25 }
  0x21   :  { %940 = vmatpush1.bf16.msra.mxu1 %v3891_v36 }
  0x22   :  { %941 = vmatprep.subr.bf16.mxu1 %v3899_v37  ;;  %860 = vmatpush1.bf16.msra.mxu0 %v3912_v38  ;;  %v73_v37 = vrot.slane %v56_v18, %v4722_v28  ;;  %v3993_v18 = vld [vmem:[%s5717_s3 + $0x2a4] ss:$16 sps:$4 sm:$0xff]  }
  0x23   :  { %861 = vmatprep.subr.bf16.mxu0 %v3913_v39 }
  0x25   :  { %942 = vmatpush1.bf16.msra.mxu1 %v3897_v40 }
  0x26   :  { %943 = vmatprep.subr.bf16.mxu1 %v3905_v41  ;;  %862 = vmatpush1.bf16.msra.mxu0 %v3918_v42 }
  0x27   :  { %863 = vmatprep.subr.bf16.mxu0 %v3919_v43 }
  0x29   :  { %944 = vmatpush1.bf16.msra.mxu1 %v3903_v44 }
  0x2a   :  { %945 = vmatprep.subr.bf16.mxu1 %v3911_v45  ;;  %864 = vmatpush1.bf16.msra.mxu0 %v3924_v47  ;;  %v3961_v45 = vld [vmem:[%s5717_s3 + $0x200] ss:$16 sps:$4 sm:$0xff]  }
  0x2b   :  { %865 = vmatprep.subr.bf16.mxu0 %v3925_v48 }
  0x2d   :  { %946 = vmatpush1.bf16.msra.mxu1 %v3909_v46  ;;  %v3964_v46 = vld [vmem:[%s5717_s3 + $0x208] ss:$16 sps:$4 sm:$0xff]  }
  0x2e   :  { %947 = vmatprep.subr.bf16.mxu1 %v3917_v49  ;;  %866 = vmatpush1.bf16.msra.mxu0 %v3930_v50  ;;  %v3969_v49 = vld [vmem:[%s5717_s3 + $0x224] ss:$16 sps:$4 sm:$0xff]   ;;  %v3972_v50 = vld [vmem:[%s5717_s3 + $0x22c] ss:$16 sps:$4 sm:$0xff]  }
  0x2f   :  { %867 = vmatprep.subr.bf16.mxu0 %v3931_v51 }
  0x31   :  { %948 = vmatpush1.bf16.msra.mxu1 %v3915_v52 }
  0x32   :  { %949 = vmatprep.subr.bf16.mxu1 %v3923_v53  ;;  %868 = vmatpush1.bf16.msra.mxu0 %v3936_v54  ;;  %v3967_v53 = vld [vmem:[%s5717_s3 + $0x220] ss:$16 sps:$4 sm:$0xff]  }
  0x33   :  { %869 = vmatprep.subr.bf16.mxu0 %v3937_v55 }
  0x35   :  { %950 = vmatpush1.bf16.msra.mxu1 %v3921_v56 }
  0x36   :  { %951 = vmatprep.subr.bf16.mxu1 %v3929_v57  ;;  %870 = vmatpush1.bf16.msra.mxu0 %v3942_v58  ;;  %v3970_v57 = vld [vmem:[%s5717_s3 + $0x228] ss:$16 sps:$4 sm:$0xff]  }
  0x37   :  { %871 = vmatprep.subr.bf16.mxu0 %v3943_v59 }
  0x39   :  { %952 = vmatpush1.bf16.msra.mxu1 %v3927_v60  ;;  %v3975_v60 = vld [vmem:[%s5717_s3 + $0x244] ss:$16 sps:$4 sm:$0xff]  }
  0x3a   :  { %953 = vmatprep.subr.bf16.mxu1 %v3935_v61  ;;  %872 = vmatpush1.bf16.msra.mxu0 %v3948_v4 }
  0x3b   :  { %873 = vmatprep.subr.bf16.mxu0 %v3949_v5 }
  0x3d   :  { %954 = vmatpush1.bf16.msra.mxu1 %v3933_v62 }
  0x3e   :  { %955 = vmatprep.subr.bf16.mxu1 %v3941_v63  ;;  %874 = vmatpush1.bf16.msra.mxu0 %v3954_v8  ;;  %v3978_v63 = vld [vmem:[%s5717_s3 + $0x24c] ss:$16 sps:$4 sm:$0xff]  }
  0x3f   :  { %875 = vmatprep.subr.bf16.mxu0 %v3955_v9  ;;  %v3981_v9 = vld [vmem:[%s5717_s3 + $0x264] ss:$16 sps:$4 sm:$0xff]  }
  0x41   :  { %956 = vmatpush1.bf16.msra.mxu1 %v3939_v0 }
  0x42   :  { %957 = vmatprep.subr.bf16.mxu1 %v3947_v1  ;;  %876 = vmatpush1.bf16.msra.mxu0 %v3960_v12  ;;  %v3982_v12 = vld [vmem:[%s5717_s3 + $0x268] ss:$16 sps:$4 sm:$0xff]  }
  0x43   :  { %888 = vmatprep.subr.bf16.mxu0 %v3963_v13  ;;  %v3987_v13 = vld [vmem:[%s5717_s3 + $0x284] ss:$16 sps:$4 sm:$0xff]  }
  0x45   :  { %958 = vmatpush1.bf16.msra.mxu1 %v3945_v3 }
  0x46   :  { %959 = vmatprep.subr.bf16.mxu1 %v3953_v6  ;;  %v3973_v6 = vld [vmem:[%s5717_s3 + $0x240] ss:$16 sps:$4 sm:$0xff]  }
  0x49   :  { %960 = vmatpush1.bf16.msra.mxu1 %v3951_v7  ;;  %v3976_v7 = vld [vmem:[%s5717_s3 + $0x248] ss:$16 sps:$4 sm:$0xff]  }
  0x4a   :  { %961 = vmatprep.subr.bf16.mxu1 %v3959_v10  ;;  %v3984_v10 = vld [vmem:[%s5717_s3 + $0x26c] ss:$16 sps:$4 sm:$0xff]  }
  0x4d   :  { %962 = vmatpush1.bf16.msra.mxu1 %v3957_v11  ;;  %v3979_v11 = vld [vmem:[%s5717_s3 + $0x260] ss:$16 sps:$4 sm:$0xff]  }
  0x4e   :  { %974 = vmatprep.subr.bf16.mxu1 %v3966_v14  ;;  %v3990_v14 = vld [vmem:[%s5717_s3 + $0x28c] ss:$16 sps:$4 sm:$0xff]  }
  0xdb   :  { %v139_v22 = vpop.f32.mrb[0].mxu1 }
  0xdc   :  { %v140_v23 = vadd.f32 %v139_v22, %v61_v20  ;;  %v141_v24 = vpop.f32.mrb[1].mxu1  ;;  %v3994_v22 = vld [vmem:[%s5717_s3 + $0x2a8] ss:$16 sps:$4 sm:$0xff]  }
  0xdd   :  { %v142_v26 = vadd.f32 %v141_v24, %v65_v21  ;;  %v143_v27 = vpop.f32.mrb[2].mxu1  ;;  %v4002_v24 = vld [vmem:[%s5717_s3 + $0x2cc] ss:$16 sps:$4 sm:$0xff]  }
  0xde   :  { %v199_v29 = vmul.f32 0.01, %v140_v23  ;;  %v144_v30 = vadd.f32 %v143_v27, %v61_v20  ;;  %v145_v31 = vpop.f32.mrb[3].mxu1  ;;  %vm191_vm2 = vcmp.gt.f32.partialorder %v140_v23, 0.0  ;;  %v3996_v20 = vld [vmem:[%s5717_s3 + $0x2ac] ss:$16 sps:$4 sm:$0xff]  }
  0xdf   :  { %v200_v32 = vmul.f32 0.01, %v142_v26  ;;  %v146_v33 = vadd.f32 %v145_v31, %v65_v21  ;;  %vm192_vm4 = vcmp.gt.f32.partialorder %v142_v26, 0.0  ;;  %v3991_v21 = vld [vmem:[%s5717_s3 + $0x2a0] ss:$16 sps:$4 sm:$0xff]  }
  0xe0   :  { %vm195_vm3 = vcmp.gt.f32.partialorder %v144_v30, 0.0  ;;  %v203_v34 = vmul.f32 0.01, %v144_v30  ;;  %v207_v38 = vsel %vm191_vm2, %v140_v23, %v199_v29  ;;  %v3999_v23 = vld [vmem:[%s5717_s3 + $0x2c4] ss:$16 sps:$4 sm:$0xff]  }
  0xe1   :  { %v204_v36 = vmul.f32 0.01, %v146_v33  ;;  %vm196_vm5 = vcmp.gt.f32.partialorder %v146_v33, 0.0  ;;  %v208_v40 = vsel %vm192_vm4, %v142_v26, %v200_v32  ;;  %v3997_v26 = vld [vmem:[%s5717_s3 + $0x2c0] ss:$16 sps:$4 sm:$0xff]  }
  0xe2   :  { %v211_v39 = vsel %vm195_vm3, %v144_v30, %v203_v34  ;;  %v4000_v27 = vld [vmem:[%s5717_s3 + $0x2c8] ss:$16 sps:$4 sm:$0xff]   ;;  %v4005_v29 = vld [vmem:[%s5717_s3 + $0x2e4] ss:$16 sps:$4 sm:$0xff]   ;;  %v4008_v30 = vld [vmem:[%s5717_s3 + $0x2ec] ss:$16 sps:$4 sm:$0xff]  }
  0xe3   :  { %v212_v41 = vsel %vm196_vm5, %v146_v33, %v204_v36  ;;  %v215_v42 = vpack.c.bf16 %v211_v39, %v207_v38  ;;  %v182_v43 = vpop.f32.mrb[4].mxu1  ;;  %v4003_v31 = vld [vmem:[%s5717_s3 + $0x2e0] ss:$16 sps:$4 sm:$0xff]   ;;  %v4006_v32 = vld [vmem:[%s5717_s3 + $0x2e8] ss:$16 sps:$4 sm:$0xff]  }
  0xe4   :  { %v216_v44 = vpack.c.bf16 %v212_v41, %v208_v40  ;;  %v183_v47 = vadd.f32 %v182_v43, %v69_v35  ;;  %v184_v48 = vpop.f32.mrb[5].mxu1  ;;  %v4011_v33 = vld [vmem:[%s5717_s3 + $0x304] ss:$16 sps:$4 sm:$0xff]   ;;  %v4014_v34 = vld [vmem:[%s5717_s3 + $0x30c] ss:$16 sps:$4 sm:$0xff]  }
  0xe5   :  { %v185_v51 = vadd.f32 %v184_v48, %v73_v37  ;;  %v186_v52 = vpop.f32.mrb[6].mxu1  ;;  %v4012_v36 = vld [vmem:[%s5717_s3 + $0x308] ss:$16 sps:$4 sm:$0xff]   ;;  %v4020_v38 = vld [vmem:[%s5718_s5 + $0xc] ss:$16 sps:$4 sm:$0xff]  }
  0xe6   :  { %877 = vmatprep.mubr.bf16.mxu0 %v216_v44  ;;  %963 = vmatprep.mubr.bf16.mxu1 %v216_v44  ;;  %vm193_vm6 = vcmp.gt.f32.partialorder %v183_v47, 0.0  ;;  %v201_v54 = vmul.f32 0.01, %v183_v47  ;;  %v187_v55 = vadd.f32 %v186_v52, %v69_v35  ;;  %v188_v56 = vpop.f32.mrb[7].mxu1  ;;  %v4009_v35 = vld [vmem:[%s5717_s3 + $0x300] ss:$16 sps:$4 sm:$0xff]  }
  0xe7   :  { %878 = vmatmul.mubr.bf16.vlgmr.msra.gmra.mrb[0].mxu0 %v215_v42  ;;  %964 = vmatmul.mubr.bf16.vlgmr.msra.gmra.mrb[8].mxu1 %v215_v42  ;;  %vm194_vm7 = vcmp.gt.f32.partialorder %v185_v51, 0.0  ;;  %v202_v58 = vmul.f32 0.01, %v185_v51  ;;  %v189_v59 = vadd.f32 %v188_v56, %v73_v37  ;;  %v4017_v37 = vld [vmem:[%s5718_s5 + $0x4] ss:$16 sps:$4 sm:$0xff]  }
  0xe8   :  { %889 = vmatpush1.bf16.msra.mxu0 %v3961_v45  ;;  %975 = vmatpush1.bf16.msra.mxu1 %v3964_v46  ;;  %v209_v61 = vsel %vm193_vm6, %v183_v47, %v201_v54  ;;  %vm197_vm8 = vcmp.gt.f32.partialorder %v187_v55, 0.0  ;;  %v205_v62 = vmul.f32 0.01, %v187_v55  ;;  %v4015_v39 = vld [vmem:[%s5718_s5] ss:$16 sps:$4 sm:$0xff]  }
  0xe9   :  { %890 = vmatprep.subr.bf16.mxu0 %v3969_v49  ;;  %976 = vmatprep.subr.bf16.mxu1 %v3972_v50  ;;  %v210_v0 = vsel %vm194_vm7, %v185_v51, %v202_v58  ;;  %vm198_vm9 = vcmp.gt.f32.partialorder %v189_v59, 0.0  ;;  %v206_v1 = vmul.f32 0.01, %v189_v59  ;;  %v4018_v40 = vld [vmem:[%s5718_s5 + $0x8] ss:$16 sps:$4 sm:$0xff]  }
  0xea   :  { %v213_v3 = vsel %vm197_vm8, %v187_v55, %v205_v62  ;;  %v4023_v41 = vld [vmem:[%s5718_s5 + $0x24] ss:$16 sps:$4 sm:$0xff]   ;;  %v4026_v42 = vld [vmem:[%s5718_s5 + $0x2c] ss:$16 sps:$4 sm:$0xff]   ;;  %v4021_v43 = vld [vmem:[%s5718_s5 + $0x20] ss:$16 sps:$4 sm:$0xff]  }
  0xeb   :  { %v4750_v4 = vpack.c.bf16 %v213_v3, %v209_v61  ;;  %v214_v5 = vsel %vm198_vm9, %v189_v59, %v206_v1  ;;  %v4024_v44 = vld [vmem:[%s5718_s5 + $0x28] ss:$16 sps:$4 sm:$0xff]   ;;  %v4029_v45 = vld [vmem:[%s5718_s5 + $0x44] ss:$16 sps:$4 sm:$0xff]   ;;  %v4032_v46 = vld [vmem:[%s5718_s5 + $0x4c] ss:$16 sps:$4 sm:$0xff]  }
  0xec   :  { %891 = vmatpush1.bf16.msra.mxu0 %v3967_v53  ;;  %977 = vmatpush1.bf16.msra.mxu1 %v3970_v57  ;;  %v218_v8 = vpack.c.bf16 %v214_v5, %v210_v0  ;;  %v4027_v47 = vld [vmem:[%s5718_s5 + $0x40] ss:$16 sps:$4 sm:$0xff]   ;;  %v4030_v48 = vld [vmem:[%s5718_s5 + $0x48] ss:$16 sps:$4 sm:$0xff]   ;;  %v4035_v49 = vld [vmem:[%s5718_s5 + $0x64] ss:$16 sps:$4 sm:$0xff]  }
  0xed   :  { %892 = vmatprep.subr.bf16.mxu0 %v3975_v60  ;;  %978 = vmatprep.subr.bf16.mxu1 %v3978_v63  ;;  %v4038_v50 = vld [vmem:[%s5718_s5 + $0x6c] ss:$16 sps:$4 sm:$0xff]   ;;  %v4033_v51 = vld [vmem:[%s5718_s5 + $0x60] ss:$16 sps:$4 sm:$0xff]   ;;  %v4036_v52 = vld [vmem:[%s5718_s5 + $0x68] ss:$16 sps:$4 sm:$0xff]  }
  0xee   :  { %3495 = vmatprep.mubr.msk.bf16.mxu0 %vm841_vm10, %v218_v8  ;;  %3496 = vmatprep.mubr.msk.bf16.mxu1 %vm841_vm10, %v218_v8  ;;  %v4041_v53 = vld [vmem:[%s5718_s5 + $0x84] ss:$16 sps:$4 sm:$0xff]   ;;  %v4044_v54 = vld [vmem:[%s5718_s5 + $0x8c] ss:$16 sps:$4 sm:$0xff]   ;;  %v4039_v55 = vld [vmem:[%s5718_s5 + $0x80] ss:$16 sps:$4 sm:$0xff]  }
  0xef   :  { %v4042_v56 = vld [vmem:[%s5718_s5 + $0x88] ss:$16 sps:$4 sm:$0xff]   ;;  %v4047_v57 = vld [vmem:[%s5718_s5 + $0xa4] ss:$16 sps:$4 sm:$0xff]   ;;  %v4050_v58 = vld [vmem:[%s5718_s5 + $0xac] ss:$16 sps:$4 sm:$0xff]  }
  0xf0   :  { %893 = vmatpush1.bf16.msra.mxu0 %v3973_v6  ;;  %979 = vmatpush1.bf16.msra.mxu1 %v3976_v7  ;;  %v4045_v59 = vld [vmem:[%s5718_s5 + $0xa0] ss:$16 sps:$4 sm:$0xff]   ;;  %v4048_v60 = vld [vmem:[%s5718_s5 + $0xa8] ss:$16 sps:$4 sm:$0xff]   ;;  %v4053_v61 = vld [vmem:[%s5718_s5 + $0xc4] ss:$16 sps:$4 sm:$0xff]  }
  0xf1   :  { %894 = vmatprep.subr.bf16.mxu0 %v3981_v9  ;;  %980 = vmatprep.subr.bf16.mxu1 %v3984_v10  ;;  %v4056_v62 = vld [vmem:[%s5718_s5 + $0xcc] ss:$16 sps:$4 sm:$0xff]   ;;  %v4051_v63 = vld [vmem:[%s5718_s5 + $0xc0] ss:$16 sps:$4 sm:$0xff]   ;;  %v4054_v0 = vld [vmem:[%s5718_s5 + $0xc8] ss:$16 sps:$4 sm:$0xff]  }
  0xf2   :  { %v4059_v1 = vld [vmem:[%s5718_s5 + $0xe4] ss:$16 sps:$4 sm:$0xff]   ;;  %v4062_v3 = vld [vmem:[%s5718_s5 + $0xec] ss:$16 sps:$4 sm:$0xff]   ;;  %v4060_v5 = vld [vmem:[%s5718_s5 + $0xe8] ss:$16 sps:$4 sm:$0xff]  }
  0xf3   :  { %v4065_v6 = vld [vmem:[%s5718_s5 + $0x104] ss:$16 sps:$4 sm:$0xff]   ;;  %v4068_v7 = vld [vmem:[%s5718_s5 + $0x10c] ss:$16 sps:$4 sm:$0xff]   ;;  %v4063_v8 = vld [vmem:[%s5718_s5 + $0x100] ss:$16 sps:$4 sm:$0xff]  }
  0xf4   :  { %895 = vmatpush1.bf16.msra.mxu0 %v3979_v11  ;;  %981 = vmatpush1.bf16.msra.mxu1 %v3982_v12  ;;  %v4066_v9 = vld [vmem:[%s5718_s5 + $0x108] ss:$16 sps:$4 sm:$0xff]   ;;  %v4071_v10 = vld [vmem:[%s5718_s5 + $0x124] ss:$16 sps:$4 sm:$0xff]   ;;  %v4074_v11 = vld [vmem:[%s5718_s5 + $0x12c] ss:$16 sps:$4 sm:$0xff]  }
  0xf5   :  { %896 = vmatprep.subr.bf16.mxu0 %v3987_v13  ;;  %982 = vmatprep.subr.bf16.mxu1 %v3990_v14  ;;  %v4069_v12 = vld [vmem:[%s5718_s5 + $0x120] ss:$16 sps:$4 sm:$0xff]   ;;  %v4072_v13 = vld [vmem:[%s5718_s5 + $0x128] ss:$16 sps:$4 sm:$0xff]   ;;  %v4077_v14 = vld [vmem:[%s5718_s5 + $0x144] ss:$16 sps:$4 sm:$0xff]  }
  0xf8   :  { %897 = vmatpush1.bf16.msra.mxu0 %v3985_v15  ;;  %983 = vmatpush1.bf16.msra.mxu1 %v3988_v16  ;;  %v4080_v15 = vld [vmem:[%s5718_s5 + $0x14c] ss:$16 sps:$4 sm:$0xff]   ;;  %v4075_v16 = vld [vmem:[%s5718_s5 + $0x140] ss:$16 sps:$4 sm:$0xff]  }
  0xf9   :  { %898 = vmatprep.subr.bf16.mxu0 %v3993_v18  ;;  %984 = vmatprep.subr.bf16.mxu1 %v3996_v20  ;;  %v4078_v18 = vld [vmem:[%s5718_s5 + $0x148] ss:$16 sps:$4 sm:$0xff]   ;;  %v4083_v20 = vld [vmem:[%s5718_s5 + $0x164] ss:$16 sps:$4 sm:$0xff]  }
  0xfc   :  { %899 = vmatpush1.bf16.msra.mxu0 %v3991_v21  ;;  %985 = vmatpush1.bf16.msra.mxu1 %v3994_v22  ;;  %v4086_v21 = vld [vmem:[%s5718_s5 + $0x16c] ss:$16 sps:$4 sm:$0xff]   ;;  %v4081_v22 = vld [vmem:[%s5718_s5 + $0x160] ss:$16 sps:$4 sm:$0xff]  }
  0xfd   :  { %900 = vmatprep.subr.bf16.mxu0 %v3999_v23  ;;  %986 = vmatprep.subr.bf16.mxu1 %v4002_v24  ;;  %v4084_v23 = vld [vmem:[%s5718_s5 + $0x168] ss:$16 sps:$4 sm:$0xff]   ;;  %v4089_v24 = vld [vmem:[%s5718_s5 + $0x184] ss:$16 sps:$4 sm:$0xff]  }
 0x100   :  { %901 = vmatpush1.bf16.msra.mxu0 %v3997_v26  ;;  %987 = vmatpush1.bf16.msra.mxu1 %v4000_v27  ;;  %v4092_v26 = vld [vmem:[%s5718_s5 + $0x18c] ss:$16 sps:$4 sm:$0xff]   ;;  %v4087_v27 = vld [vmem:[%s5718_s5 + $0x180] ss:$16 sps:$4 sm:$0xff]  }
 0x101   :  { %902 = vmatprep.subr.bf16.mxu0 %v4005_v29  ;;  %988 = vmatprep.subr.bf16.mxu1 %v4008_v30  ;;  %v4090_v29 = vld [vmem:[%s5718_s5 + $0x188] ss:$16 sps:$4 sm:$0xff]   ;;  %v4095_v30 = vld [vmem:[%s5718_s5 + $0x1a4] ss:$16 sps:$4 sm:$0xff]  }
 0x104   :  { %903 = vmatpush1.bf16.msra.mxu0 %v4003_v31  ;;  %989 = vmatpush1.bf16.msra.mxu1 %v4006_v32  ;;  %v4098_v31 = vld [vmem:[%s5718_s5 + $0x1ac] ss:$16 sps:$4 sm:$0xff]   ;;  %v4093_v32 = vld [vmem:[%s5718_s5 + $0x1a0] ss:$16 sps:$4 sm:$0xff]  }
 0x105   :  { %904 = vmatprep.subr.bf16.mxu0 %v4011_v33  ;;  %990 = vmatprep.subr.bf16.mxu1 %v4014_v34  ;;  %v4096_v33 = vld [vmem:[%s5718_s5 + $0x1a8] ss:$16 sps:$4 sm:$0xff]   ;;  %v4101_v34 = vld [vmem:[%s5718_s5 + $0x1c4] ss:$16 sps:$4 sm:$0xff]  }
 0x108   :  { %905 = vmatpush1.bf16.msra.mxu0 %v4009_v35  ;;  %991 = vmatpush1.bf16.msra.mxu1 %v4012_v36  ;;  %v4104_v35 = vld [vmem:[%s5718_s5 + $0x1cc] ss:$16 sps:$4 sm:$0xff]   ;;  %v4099_v36 = vld [vmem:[%s5718_s5 + $0x1c0] ss:$16 sps:$4 sm:$0xff]  }
 0x109   :  { %1670 = vmatprep.subr.bf16.mxu0 %v4017_v37  ;;  %1756 = vmatprep.subr.bf16.mxu1 %v4020_v38  ;;  %v4102_v37 = vld [vmem:[%s5718_s5 + $0x1c8] ss:$16 sps:$4 sm:$0xff]   ;;  %v4107_v38 = vld [vmem:[%s5718_s5 + $0x1e4] ss:$16 sps:$4 sm:$0xff]  }
 0x10b   :  { %921 = vmatmul.mubr.bf16.vlgmr.msra.gmra.mrb[0].mxu0 %v4750_v4  ;;  %1007 = vmatmul.mubr.bf16.vlgmr.msra.gmra.mrb[8].mxu1 %v4750_v4  ;;  %v4057_v4 = vld [vmem:[%s5718_s5 + $0xe0] ss:$16 sps:$4 sm:$0xff]  }
 0x10c   :  { %1671 = vmatpush1.bf16.msra.mxu0 %v4015_v39  ;;  %1757 = vmatpush1.bf16.msra.mxu1 %v4018_v40  ;;  %v4110_v39 = vld [vmem:[%s5718_s5 + $0x1ec] ss:$16 sps:$4 sm:$0xff]   ;;  %v4105_v40 = vld [vmem:[%s5718_s5 + $0x1e0] ss:$16 sps:$4 sm:$0xff]  }
 0x10d   :  { %1672 = vmatprep.subr.bf16.mxu0 %v4023_v41  ;;  %1758 = vmatprep.subr.bf16.mxu1 %v4026_v42  ;;  %v4108_v41 = vld [vmem:[%s5718_s5 + $0x1e8] ss:$16 sps:$4 sm:$0xff]   ;;  %v4113_v42 = vld [vmem:[%s5718_s5 + $0x204] ss:$16 sps:$4 sm:$0xff]  }
 0x110   :  { %1673 = vmatpush1.bf16.msra.mxu0 %v4021_v43  ;;  %1759 = vmatpush1.bf16.msra.mxu1 %v4024_v44  ;;  %v4116_v43 = vld [vmem:[%s5718_s5 + $0x20c] ss:$16 sps:$4 sm:$0xff]   ;;  %v319_v44 = vld [vmem:[%s5721_s4] sm:$0xf] }
 0x111   :  { %1674 = vmatprep.subr.bf16.mxu0 %v4029_v45  ;;  %1760 = vmatprep.subr.bf16.mxu1 %v4032_v46  ;;  %v324_v45 = vrot.slane %v319_v44, %v4711_v17  ;;  %v332_v46 = vrot.slane %v319_v44, %v4720_v25 }
 0x114   :  { %1675 = vmatpush1.bf16.msra.mxu0 %v4027_v47  ;;  %1761 = vmatpush1.bf16.msra.mxu1 %v4030_v48  ;;  %v328_v47 = vrot.slane %v319_v44, %v4716_v19  ;;  %v336_v48 = vrot.slane %v319_v44, %v4722_v28  ;;  %v4143_v44 = vld [vmem:[%s5718_s5 + $0x2a4] ss:$16 sps:$4 sm:$0xff]  }
 0x115   :  { %1676 = vmatprep.subr.bf16.mxu0 %v4035_v49  ;;  %1762 = vmatprep.subr.bf16.mxu1 %v4038_v50 }
 0x118   :  { %1677 = vmatpush1.bf16.msra.mxu0 %v4033_v51  ;;  %1763 = vmatpush1.bf16.msra.mxu1 %v4036_v52 }
 0x119   :  { %1678 = vmatprep.subr.bf16.mxu0 %v4041_v53  ;;  %1764 = vmatprep.subr.bf16.mxu1 %v4044_v54 }
 0x11c   :  { %1679 = vmatpush1.bf16.msra.mxu0 %v4039_v55  ;;  %1765 = vmatpush1.bf16.msra.mxu1 %v4042_v56 }
 0x11d   :  { %1680 = vmatprep.subr.bf16.mxu0 %v4047_v57  ;;  %1766 = vmatprep.subr.bf16.mxu1 %v4050_v58 }
 0x120   :  { %1681 = vmatpush1.bf16.msra.mxu0 %v4045_v59  ;;  %1767 = vmatpush1.bf16.msra.mxu1 %v4048_v60 }
 0x121   :  { %1682 = vmatprep.subr.bf16.mxu0 %v4053_v61  ;;  %1768 = vmatprep.subr.bf16.mxu1 %v4056_v62 }
 0x124   :  { %1683 = vmatpush1.bf16.msra.mxu0 %v4051_v63  ;;  %1769 = vmatpush1.bf16.msra.mxu1 %v4054_v0 }
 0x125   :  { %1684 = vmatprep.subr.bf16.mxu0 %v4059_v1  ;;  %1770 = vmatprep.subr.bf16.mxu1 %v4062_v3 }
 0x128   :  { %1685 = vmatpush1.bf16.msra.mxu0 %v4057_v4  ;;  %1771 = vmatpush1.bf16.msra.mxu1 %v4060_v5 }
 0x129   :  { %1686 = vmatprep.subr.bf16.mxu0 %v4065_v6  ;;  %1772 = vmatprep.subr.bf16.mxu1 %v4068_v7 }
 0x12c   :  { %1687 = vmatpush1.bf16.msra.mxu0 %v4063_v8  ;;  %1773 = vmatpush1.bf16.msra.mxu1 %v4066_v9 }
 0x12d   :  { %1688 = vmatprep.subr.bf16.mxu0 %v4071_v10  ;;  %1774 = vmatprep.subr.bf16.mxu1 %v4074_v11 }
 0x130   :  { %1689 = vmatpush1.bf16.msra.mxu0 %v4069_v12  ;;  %1775 = vmatpush1.bf16.msra.mxu1 %v4072_v13 }
 0x131   :  { %1690 = vmatprep.subr.bf16.mxu0 %v4077_v14  ;;  %1776 = vmatprep.subr.bf16.mxu1 %v4080_v15 }
 0x134   :  { %1691 = vmatpush1.bf16.msra.mxu0 %v4075_v16  ;;  %1777 = vmatpush1.bf16.msra.mxu1 %v4078_v18 }
 0x135   :  { %1692 = vmatprep.subr.bf16.mxu0 %v4083_v20  ;;  %1778 = vmatprep.subr.bf16.mxu1 %v4086_v21 }
 0x138   :  { %1693 = vmatpush1.bf16.msra.mxu0 %v4081_v22  ;;  %1779 = vmatpush1.bf16.msra.mxu1 %v4084_v23 }
 0x139   :  { %1694 = vmatprep.subr.bf16.mxu0 %v4089_v24  ;;  %1780 = vmatprep.subr.bf16.mxu1 %v4092_v26  ;;  %v4111_v24 = vld [vmem:[%s5718_s5 + $0x200] ss:$16 sps:$4 sm:$0xff]   ;;  %v4114_v26 = vld [vmem:[%s5718_s5 + $0x208] ss:$16 sps:$4 sm:$0xff]  }
 0x13c   :  { %1695 = vmatpush1.bf16.msra.mxu0 %v4087_v27  ;;  %1781 = vmatpush1.bf16.msra.mxu1 %v4090_v29  ;;  %v4119_v27 = vld [vmem:[%s5718_s5 + $0x224] ss:$16 sps:$4 sm:$0xff]   ;;  %v4122_v29 = vld [vmem:[%s5718_s5 + $0x22c] ss:$16 sps:$4 sm:$0xff]  }
 0x13d   :  { %1696 = vmatprep.subr.bf16.mxu0 %v4095_v30  ;;  %1782 = vmatprep.subr.bf16.mxu1 %v4098_v31  ;;  %v4117_v30 = vld [vmem:[%s5718_s5 + $0x220] ss:$16 sps:$4 sm:$0xff]   ;;  %v4120_v31 = vld [vmem:[%s5718_s5 + $0x228] ss:$16 sps:$4 sm:$0xff]  }
 0x140   :  { %1697 = vmatpush1.bf16.msra.mxu0 %v4093_v32  ;;  %1783 = vmatpush1.bf16.msra.mxu1 %v4096_v33  ;;  %v4125_v32 = vld [vmem:[%s5718_s5 + $0x244] ss:$16 sps:$4 sm:$0xff]   ;;  %v4128_v33 = vld [vmem:[%s5718_s5 + $0x24c] ss:$16 sps:$4 sm:$0xff]  }
 0x141   :  { %1698 = vmatprep.subr.bf16.mxu0 %v4101_v34  ;;  %1784 = vmatprep.subr.bf16.mxu1 %v4104_v35  ;;  %v4123_v34 = vld [vmem:[%s5718_s5 + $0x240] ss:$16 sps:$4 sm:$0xff]   ;;  %v4126_v35 = vld [vmem:[%s5718_s5 + $0x248] ss:$16 sps:$4 sm:$0xff]  }
 0x144   :  { %1699 = vmatpush1.bf16.msra.mxu0 %v4099_v36  ;;  %1785 = vmatpush1.bf16.msra.mxu1 %v4102_v37  ;;  %v4131_v36 = vld [vmem:[%s5718_s5 + $0x264] ss:$16 sps:$4 sm:$0xff]   ;;  %v4134_v37 = vld [vmem:[%s5718_s5 + $0x26c] ss:$16 sps:$4 sm:$0xff]  }
 0x145   :  { %1700 = vmatprep.subr.bf16.mxu0 %v4107_v38  ;;  %1786 = vmatprep.subr.bf16.mxu1 %v4110_v39  ;;  %v4129_v38 = vld [vmem:[%s5718_s5 + $0x260] ss:$16 sps:$4 sm:$0xff]   ;;  %v4132_v39 = vld [vmem:[%s5718_s5 + $0x268] ss:$16 sps:$4 sm:$0xff]  }
 0x148   :  { %1701 = vmatpush1.bf16.msra.mxu0 %v4105_v40  ;;  %1787 = vmatpush1.bf16.msra.mxu1 %v4108_v41  ;;  %v4137_v40 = vld [vmem:[%s5718_s5 + $0x284] ss:$16 sps:$4 sm:$0xff]   ;;  %v4140_v41 = vld [vmem:[%s5718_s5 + $0x28c] ss:$16 sps:$4 sm:$0xff]  }
 0x149   :  { %1713 = vmatprep.subr.bf16.mxu0 %v4113_v42  ;;  %1799 = vmatprep.subr.bf16.mxu1 %v4116_v43  ;;  %v4135_v42 = vld [vmem:[%s5718_s5 + $0x280] ss:$16 sps:$4 sm:$0xff]   ;;  %v4138_v43 = vld [vmem:[%s5718_s5 + $0x288] ss:$16 sps:$4 sm:$0xff]  }
 0x1de   :  { %v922_v49 = vpop.f32.mrb[0].mxu0  ;;  %v1008_v50 = vpop.f32.mrb[8].mxu1 }
 0x1df   :  { %v3802_v51 = vadd.f32 %v922_v49, %v324_v45  ;;  %v3806_v52 = vadd.f32 %v1008_v50, %v332_v46  ;;  %v924_v53 = vpop.f32.mrb[1].mxu0  ;;  %v1010_v54 = vpop.f32.mrb[9].mxu1  ;;  %v4152_v49 = vld [vmem:[%s5718_s5 + $0x2cc] ss:$16 sps:$4 sm:$0xff]   ;;  %v4147_v50 = vld [vmem:[%s5718_s5 + $0x2c0] ss:$16 sps:$4 sm:$0xff]  }
 0x1e0   :  { %v3803_v55 = vadd.f32 %v924_v53, %v328_v47  ;;  %v3807_v56 = vadd.f32 %v1010_v54, %v336_v48  ;;  %v926_v57 = vpop.f32.mrb[2].mxu0  ;;  %v1012_v58 = vpop.f32.mrb[10].mxu1  ;;  %v4158_v53 = vld [vmem:[%s5718_s5 + $0x2ec] ss:$16 sps:$4 sm:$0xff]   ;;  %v4153_v54 = vld [vmem:[%s5718_s5 + $0x2e0] ss:$16 sps:$4 sm:$0xff]  }
 0x1e1   :  { %vm1017_vm11 = vcmp.gt.f32.partialorder %v3802_v51, 0.0  ;;  %v1025_v59 = vmul.f32 0.01, %v3802_v51  ;;  %vm1019_vm12 = vcmp.gt.f32.partialorder %v3806_v52, 0.0  ;;  %v1027_v60 = vmul.f32 0.01, %v3806_v52 }
 0x1e2   :  { %vm1018_vm13 = vcmp.gt.f32.partialorder %v3803_v55, 0.0  ;;  %v1026_v61 = vmul.f32 0.01, %v3803_v55  ;;  %vm1020_vm14 = vcmp.gt.f32.partialorder %v3807_v56, 0.0  ;;  %v1028_v62 = vmul.f32 0.01, %v3807_v56 }
 0x1e3   :  { %v3804_v63 = vadd.f32 %v926_v57, %v324_v45  ;;  %v3808_v0 = vadd.f32 %v1012_v58, %v332_v46  ;;  %v928_v1 = vpop.f32.mrb[3].mxu0  ;;  %v1014_v3 = vpop.f32.mrb[11].mxu1  ;;  %v1033_v4 = vsel %vm1017_vm11, %v3802_v51, %v1025_v59  ;;  %v1035_v5 = vsel %vm1019_vm12, %v3806_v52, %v1027_v60  ;;  %v4146_v45 = vld [vmem:[%s5718_s5 + $0x2ac] ss:$16 sps:$4 sm:$0xff]   ;;  %v4141_v46 = vld [vmem:[%s5718_s5 + $0x2a0] ss:$16 sps:$4 sm:$0xff]  }
 0x1e4   :  { %v3805_v6 = vadd.f32 %v928_v1, %v328_v47  ;;  %v3809_v7 = vadd.f32 %v1014_v3, %v336_v48  ;;  %v1036_v12 = vsel %vm1020_vm14, %v3807_v56, %v1028_v62  ;;  %v1034_v15 = vsel %vm1018_vm13, %v3803_v55, %v1026_v61  ;;  %v4144_v47 = vld [vmem:[%s5718_s5 + $0x2a8] ss:$16 sps:$4 sm:$0xff]   ;;  %v4149_v48 = vld [vmem:[%s5718_s5 + $0x2c4] ss:$16 sps:$4 sm:$0xff]   ;;  %v4164_v57 = vld [vmem:[%s5718_s5 + $0x30c] ss:$16 sps:$4 sm:$0xff]  }
 0x1e5   :  { %vm1021_vm15 = vcmp.gt.f32.partialorder %v3804_v63, 0.0  ;;  %v1029_v8 = vmul.f32 0.01, %v3804_v63  ;;  %vm1023_vm1 = vcmp.gt.f32.partialorder %v3808_v0, 0.0  ;;  %v1031_v9 = vmul.f32 0.01, %v3808_v0 }
 0x1e6   :  { %vm1022_vm2 = vcmp.gt.f32.partialorder %v3805_v6, 0.0  ;;  %v1030_v10 = vmul.f32 0.01, %v3805_v6  ;;  %vm1024_vm3 = vcmp.gt.f32.partialorder %v3809_v7, 0.0  ;;  %v1032_v11 = vmul.f32 0.01, %v3809_v7 }
 0x1e7   :  { %v1037_v13 = vsel %vm1021_vm15, %v3804_v63, %v1029_v8  ;;  %v1039_v14 = vsel %vm1023_vm1, %v3808_v0, %v1031_v9  ;;  %v4150_v51 = vld [vmem:[%s5718_s5 + $0x2c8] ss:$16 sps:$4 sm:$0xff]   ;;  %v4155_v52 = vld [vmem:[%s5718_s5 + $0x2e4] ss:$16 sps:$4 sm:$0xff]   ;;  %v4159_v58 = vld [vmem:[%s5718_s5 + $0x300] ss:$16 sps:$4 sm:$0xff]  }
 0x1e8   :  { %v1041_v16 = vpack.c.bf16 %v1037_v13, %v1033_v4  ;;  %v5041_v18 = vpack.c.bf16 %v1039_v14, %v1035_v5  ;;  %v1040_v20 = vsel %vm1024_vm3, %v3809_v7, %v1032_v11  ;;  %v1038_v21 = vsel %vm1022_vm2, %v3805_v6, %v1030_v10  ;;  %v4156_v55 = vld [vmem:[%s5718_s5 + $0x2e8] ss:$16 sps:$4 sm:$0xff]   ;;  %v4161_v56 = vld [vmem:[%s5718_s5 + $0x304] ss:$16 sps:$4 sm:$0xff]   ;;  %v4170_v61 = vld [vmem:[%s5720_s7 + $0xc] ss:$16 sps:$4 sm:$0xff]  }
 0x1e9   :  { %v1044_v22 = vpack.c.bf16 %v1040_v20, %v1036_v12  ;;  %v1042_v23 = vpack.c.bf16 %v1038_v21, %v1034_v15  ;;  %v4162_v59 = vld [vmem:[%s5718_s5 + $0x308] ss:$16 sps:$4 sm:$0xff]   ;;  %v4167_v60 = vld [vmem:[%s5720_s7 + $0x4] ss:$16 sps:$4 sm:$0xff]   ;;  %v4165_v62 = vld [vmem:[%s5720_s7] ss:$16 sps:$4 sm:$0xff]  }
 0x1ea   :  { %v4168_v63 = vld [vmem:[%s5720_s7 + $0x8] ss:$16 sps:$4 sm:$0xff]   ;;  %v4173_v0 = vld [vmem:[%s5720_s7 + $0x24] ss:$16 sps:$4 sm:$0xff]   ;;  %v4176_v1 = vld [vmem:[%s5720_s7 + $0x2c] ss:$16 sps:$4 sm:$0xff]  }
 0x1eb   :  { %1702 = vmatprep.mubr.bf16.mxu0 %v1042_v23  ;;  %1788 = vmatprep.mubr.bf16.mxu1 %v1042_v23  ;;  %v4171_v3 = vld [vmem:[%s5720_s7 + $0x20] ss:$16 sps:$4 sm:$0xff]   ;;  %v4174_v4 = vld [vmem:[%s5720_s7 + $0x28] ss:$16 sps:$4 sm:$0xff]   ;;  %v4179_v5 = vld [vmem:[%s5720_s7 + $0x44] ss:$16 sps:$4 sm:$0xff]  }
 0x1ec   :  { %1703 = vmatmul.mubr.bf16.vlgmr.msra.gmra.mrb[4].mxu0 %v1041_v16  ;;  %1789 = vmatmul.mubr.bf16.vlgmr.msra.gmra.mrb[12].mxu1 %v1041_v16  ;;  %v4182_v6 = vld [vmem:[%s5720_s7 + $0x4c] ss:$16 sps:$4 sm:$0xff]   ;;  %v4177_v7 = vld [vmem:[%s5720_s7 + $0x40] ss:$16 sps:$4 sm:$0xff]   ;;  %v4180_v8 = vld [vmem:[%s5720_s7 + $0x48] ss:$16 sps:$4 sm:$0xff]  }
 0x1ed   :  { %1714 = vmatpush1.bf16.msra.mxu0 %v4111_v24  ;;  %1800 = vmatpush1.bf16.msra.mxu1 %v4114_v26  ;;  %v4185_v9 = vld [vmem:[%s5720_s7 + $0x64] ss:$16 sps:$4 sm:$0xff]   ;;  %v4188_v10 = vld [vmem:[%s5720_s7 + $0x6c] ss:$16 sps:$4 sm:$0xff]   ;;  %v4183_v11 = vld [vmem:[%s5720_s7 + $0x60] ss:$16 sps:$4 sm:$0xff]  }
 0x1ee   :  { %3597 = vmatprep.mubr.msk.bf16.mxu0 %vm841_vm10, %v1044_v22  ;;  %3598 = vmatprep.mubr.msk.bf16.mxu1 %vm841_vm10, %v1044_v22  ;;  %v4186_v12 = vld [vmem:[%s5720_s7 + $0x68] ss:$16 sps:$4 sm:$0xff]   ;;  %v4191_v13 = vld [vmem:[%s5720_s7 + $0x84] ss:$16 sps:$4 sm:$0xff]   ;;  %v4194_v14 = vld [vmem:[%s5720_s7 + $0x8c] ss:$16 sps:$4 sm:$0xff]  }
 0x1ef   :  { %1715 = vmatprep.subr.bf16.mxu0 %v4119_v27  ;;  %1801 = vmatprep.subr.bf16.mxu1 %v4122_v29  ;;  %v4189_v15 = vld [vmem:[%s5720_s7 + $0x80] ss:$16 sps:$4 sm:$0xff]   ;;  %v4192_v16 = vld [vmem:[%s5720_s7 + $0x88] ss:$16 sps:$4 sm:$0xff]   ;;  %v4200_v20 = vld [vmem:[%s5720_s7 + $0xac] ss:$16 sps:$4 sm:$0xff]  }
 0x1f0   :  { %v4195_v21 = vld [vmem:[%s5720_s7 + $0xa0] ss:$16 sps:$4 sm:$0xff]   ;;  %v4198_v22 = vld [vmem:[%s5720_s7 + $0xa8] ss:$16 sps:$4 sm:$0xff]   ;;  %v4203_v23 = vld [vmem:[%s5720_s7 + $0xc4] ss:$16 sps:$4 sm:$0xff]  }
 0x1f1   :  { %1716 = vmatpush1.bf16.msra.mxu0 %v4117_v30  ;;  %1802 = vmatpush1.bf16.msra.mxu1 %v4120_v31  ;;  %v4206_v24 = vld [vmem:[%s5720_s7 + $0xcc] ss:$16 sps:$4 sm:$0xff]   ;;  %v4201_v26 = vld [vmem:[%s5720_s7 + $0xc0] ss:$16 sps:$4 sm:$0xff]   ;;  %v4204_v27 = vld [vmem:[%s5720_s7 + $0xc8] ss:$16 sps:$4 sm:$0xff]  }
 0x1f2   :  { %1717 = vmatprep.subr.bf16.mxu0 %v4125_v32  ;;  %1803 = vmatprep.subr.bf16.mxu1 %v4128_v33  ;;  %v4209_v29 = vld [vmem:[%s5720_s7 + $0xe4] ss:$16 sps:$4 sm:$0xff]   ;;  %v4212_v30 = vld [vmem:[%s5720_s7 + $0xec] ss:$16 sps:$4 sm:$0xff]   ;;  %v4207_v31 = vld [vmem:[%s5720_s7 + $0xe0] ss:$16 sps:$4 sm:$0xff]  }
 0x1f3   :  { %v4210_v32 = vld [vmem:[%s5720_s7 + $0xe8] ss:$16 sps:$4 sm:$0xff]   ;;  %v4215_v33 = vld [vmem:[%s5720_s7 + $0x104] ss:$16 sps:$4 sm:$0xff]  }
 0x1f5   :  { %1718 = vmatpush1.bf16.msra.mxu0 %v4123_v34  ;;  %1804 = vmatpush1.bf16.msra.mxu1 %v4126_v35  ;;  %v4218_v34 = vld [vmem:[%s5720_s7 + $0x10c] ss:$16 sps:$4 sm:$0xff]   ;;  %v4213_v35 = vld [vmem:[%s5720_s7 + $0x100] ss:$16 sps:$4 sm:$0xff]  }
 0x1f6   :  { %1719 = vmatprep.subr.bf16.mxu0 %v4131_v36  ;;  %1805 = vmatprep.subr.bf16.mxu1 %v4134_v37  ;;  %v4216_v36 = vld [vmem:[%s5720_s7 + $0x108] ss:$16 sps:$4 sm:$0xff]   ;;  %v4221_v37 = vld [vmem:[%s5720_s7 + $0x124] ss:$16 sps:$4 sm:$0xff]  }
 0x1f9   :  { %1720 = vmatpush1.bf16.msra.mxu0 %v4129_v38  ;;  %1806 = vmatpush1.bf16.msra.mxu1 %v4132_v39  ;;  %v4224_v38 = vld [vmem:[%s5720_s7 + $0x12c] ss:$16 sps:$4 sm:$0xff]   ;;  %v4219_v39 = vld [vmem:[%s5720_s7 + $0x120] ss:$16 sps:$4 sm:$0xff]  }
 0x1fa   :  { %1721 = vmatprep.subr.bf16.mxu0 %v4137_v40  ;;  %1807 = vmatprep.subr.bf16.mxu1 %v4140_v41  ;;  %v4222_v40 = vld [vmem:[%s5720_s7 + $0x128] ss:$16 sps:$4 sm:$0xff]   ;;  %v4227_v41 = vld [vmem:[%s5720_s7 + $0x144] ss:$16 sps:$4 sm:$0xff]  }
 0x1fd   :  { %1722 = vmatpush1.bf16.msra.mxu0 %v4135_v42  ;;  %1808 = vmatpush1.bf16.msra.mxu1 %v4138_v43  ;;  %v4230_v42 = vld [vmem:[%s5720_s7 + $0x14c] ss:$16 sps:$4 sm:$0xff]   ;;  %v4225_v43 = vld [vmem:[%s5720_s7 + $0x140] ss:$16 sps:$4 sm:$0xff]  }
 0x1fe   :  { %1723 = vmatprep.subr.bf16.mxu0 %v4143_v44  ;;  %1809 = vmatprep.subr.bf16.mxu1 %v4146_v45  ;;  %v4228_v44 = vld [vmem:[%s5720_s7 + $0x148] ss:$16 sps:$4 sm:$0xff]   ;;  %v4233_v45 = vld [vmem:[%s5720_s7 + $0x164] ss:$16 sps:$4 sm:$0xff]  }
 0x201   :  { %1724 = vmatpush1.bf16.msra.mxu0 %v4141_v46  ;;  %1810 = vmatpush1.bf16.msra.mxu1 %v4144_v47  ;;  %v4236_v46 = vld [vmem:[%s5720_s7 + $0x16c] ss:$16 sps:$4 sm:$0xff]   ;;  %v4231_v47 = vld [vmem:[%s5720_s7 + $0x160] ss:$16 sps:$4 sm:$0xff]  }
 0x202   :  { %1725 = vmatprep.subr.bf16.mxu0 %v4149_v48  ;;  %1811 = vmatprep.subr.bf16.mxu1 %v4152_v49  ;;  %v4234_v48 = vld [vmem:[%s5720_s7 + $0x168] ss:$16 sps:$4 sm:$0xff]   ;;  %v4239_v49 = vld [vmem:[%s5720_s7 + $0x184] ss:$16 sps:$4 sm:$0xff]  }
 0x205   :  { %1726 = vmatpush1.bf16.msra.mxu0 %v4147_v50  ;;  %1812 = vmatpush1.bf16.msra.mxu1 %v4150_v51  ;;  %v4242_v50 = vld [vmem:[%s5720_s7 + $0x18c] ss:$16 sps:$4 sm:$0xff]   ;;  %v4237_v51 = vld [vmem:[%s5720_s7 + $0x180] ss:$16 sps:$4 sm:$0xff]  }
 0x206   :  { %1727 = vmatprep.subr.bf16.mxu0 %v4155_v52  ;;  %1813 = vmatprep.subr.bf16.mxu1 %v4158_v53  ;;  %v4240_v52 = vld [vmem:[%s5720_s7 + $0x188] ss:$16 sps:$4 sm:$0xff]   ;;  %v4245_v53 = vld [vmem:[%s5720_s7 + $0x1a4] ss:$16 sps:$4 sm:$0xff]  }
 0x209   :  { %1728 = vmatpush1.bf16.msra.mxu0 %v4153_v54  ;;  %1814 = vmatpush1.bf16.msra.mxu1 %v4156_v55  ;;  %v4248_v54 = vld [vmem:[%s5720_s7 + $0x1ac] ss:$16 sps:$4 sm:$0xff]   ;;  %v4243_v55 = vld [vmem:[%s5720_s7 + $0x1a0] ss:$16 sps:$4 sm:$0xff]  }
 0x20a   :  { %1729 = vmatprep.subr.bf16.mxu0 %v4161_v56  ;;  %1815 = vmatprep.subr.bf16.mxu1 %v4164_v57  ;;  %v4246_v56 = vld [vmem:[%s5720_s7 + $0x1a8] ss:$16 sps:$4 sm:$0xff]   ;;  %v4251_v57 = vld [vmem:[%s5720_s7 + $0x1c4] ss:$16 sps:$4 sm:$0xff]  }
 0x20d   :  { %1730 = vmatpush1.bf16.msra.mxu0 %v4159_v58  ;;  %1816 = vmatpush1.bf16.msra.mxu1 %v4162_v59  ;;  %v4254_v58 = vld [vmem:[%s5720_s7 + $0x1cc] ss:$16 sps:$4 sm:$0xff]   ;;  %v4249_v59 = vld [vmem:[%s5720_s7 + $0x1c0] ss:$16 sps:$4 sm:$0xff]  }
 0x20e   :  { %2495 = vmatprep.subr.bf16.mxu0 %v4167_v60  ;;  %2581 = vmatprep.subr.bf16.mxu1 %v4170_v61  ;;  %v4252_v60 = vld [vmem:[%s5720_s7 + $0x1c8] ss:$16 sps:$4 sm:$0xff]   ;;  %v4257_v61 = vld [vmem:[%s5720_s7 + $0x1e4] ss:$16 sps:$4 sm:$0xff]  }
 0x210   :  { %1746 = vmatmul.mubr.bf16.vlgmr.msra.gmra.mrb[4].mxu0 %v5041_v18  ;;  %1832 = vmatmul.mubr.bf16.vlgmr.msra.gmra.mrb[12].mxu1 %v5041_v18  ;;  %v4197_v18 = vld [vmem:[%s5720_s7 + $0xa4] ss:$16 sps:$4 sm:$0xff]  }
 0x211   :  { %2496 = vmatpush1.bf16.msra.mxu0 %v4165_v62  ;;  %2582 = vmatpush1.bf16.msra.mxu1 %v4168_v63  ;;  %v4260_v62 = vld [vmem:[%s5720_s7 + $0x1ec] ss:$16 sps:$4 sm:$0xff]   ;;  %v4255_v63 = vld [vmem:[%s5720_s7 + $0x1e0] ss:$16 sps:$4 sm:$0xff]  }
 0x212   :  { %2497 = vmatprep.subr.bf16.mxu0 %v4173_v0  ;;  %2583 = vmatprep.subr.bf16.mxu1 %v4176_v1  ;;  %v4258_v0 = vld [vmem:[%s5720_s7 + $0x1e8] ss:$16 sps:$4 sm:$0xff]   ;;  %v4263_v1 = vld [vmem:[%s5720_s7 + $0x204] ss:$16 sps:$4 sm:$0xff]  }
 0x215   :  { %2498 = vmatpush1.bf16.msra.mxu0 %v4171_v3  ;;  %2584 = vmatpush1.bf16.msra.mxu1 %v4174_v4  ;;  %v4266_v3 = vld [vmem:[%s5720_s7 + $0x20c] ss:$16 sps:$4 sm:$0xff]   ;;  %v1145_v4 = vld [vmem:[%s5723_s6] sm:$0xf] }
 0x216   :  { %2499 = vmatprep.subr.bf16.mxu0 %v4179_v5  ;;  %2585 = vmatprep.subr.bf16.mxu1 %v4182_v6  ;;  %v1150_v5 = vrot.slane %v1145_v4, %v4711_v17  ;;  %v1158_v6 = vrot.slane %v1145_v4, %v4720_v25 }
 0x219   :  { %2500 = vmatpush1.bf16.msra.mxu0 %v4177_v7  ;;  %2586 = vmatpush1.bf16.msra.mxu1 %v4180_v8  ;;  %v1154_v7 = vrot.slane %v1145_v4, %v4716_v19  ;;  %v1162_v8 = vrot.slane %v1145_v4, %v4722_v28  ;;  %v4293_v4 = vld [vmem:[%s5720_s7 + $0x2a4] ss:$16 sps:$4 sm:$0xff]  }
 0x21a   :  { %2501 = vmatprep.subr.bf16.mxu0 %v4185_v9  ;;  %2587 = vmatprep.subr.bf16.mxu1 %v4188_v10 }
 0x21d   :  { %2502 = vmatpush1.bf16.msra.mxu0 %v4183_v11  ;;  %2588 = vmatpush1.bf16.msra.mxu1 %v4186_v12 }
 0x21e   :  { %2503 = vmatprep.subr.bf16.mxu0 %v4191_v13  ;;  %2589 = vmatprep.subr.bf16.mxu1 %v4194_v14 }
 0x221   :  { %2504 = vmatpush1.bf16.msra.mxu0 %v4189_v15  ;;  %2590 = vmatpush1.bf16.msra.mxu1 %v4192_v16 }
 0x222   :  { %2505 = vmatprep.subr.bf16.mxu0 %v4197_v18  ;;  %2591 = vmatprep.subr.bf16.mxu1 %v4200_v20 }
 0x225   :  { %2506 = vmatpush1.bf16.msra.mxu0 %v4195_v21  ;;  %2592 = vmatpush1.bf16.msra.mxu1 %v4198_v22 }
 0x226   :  { %2507 = vmatprep.subr.bf16.mxu0 %v4203_v23  ;;  %2593 = vmatprep.subr.bf16.mxu1 %v4206_v24 }
 0x229   :  { %2508 = vmatpush1.bf16.msra.mxu0 %v4201_v26  ;;  %2594 = vmatpush1.bf16.msra.mxu1 %v4204_v27 }
 0x22a   :  { %2509 = vmatprep.subr.bf16.mxu0 %v4209_v29  ;;  %2595 = vmatprep.subr.bf16.mxu1 %v4212_v30 }
 0x22d   :  { %2510 = vmatpush1.bf16.msra.mxu0 %v4207_v31  ;;  %2596 = vmatpush1.bf16.msra.mxu1 %v4210_v32 }
 0x22e   :  { %2511 = vmatprep.subr.bf16.mxu0 %v4215_v33  ;;  %2597 = vmatprep.subr.bf16.mxu1 %v4218_v34 }
 0x231   :  { %2512 = vmatpush1.bf16.msra.mxu0 %v4213_v35  ;;  %2598 = vmatpush1.bf16.msra.mxu1 %v4216_v36 }
 0x232   :  { %2513 = vmatprep.subr.bf16.mxu0 %v4221_v37  ;;  %2599 = vmatprep.subr.bf16.mxu1 %v4224_v38 }
 0x235   :  { %2514 = vmatpush1.bf16.msra.mxu0 %v4219_v39  ;;  %2600 = vmatpush1.bf16.msra.mxu1 %v4222_v40 }
 0x236   :  { %2515 = vmatprep.subr.bf16.mxu0 %v4227_v41  ;;  %2601 = vmatprep.subr.bf16.mxu1 %v4230_v42 }
 0x239   :  { %2516 = vmatpush1.bf16.msra.mxu0 %v4225_v43  ;;  %2602 = vmatpush1.bf16.msra.mxu1 %v4228_v44 }
 0x23a   :  { %2517 = vmatprep.subr.bf16.mxu0 %v4233_v45  ;;  %2603 = vmatprep.subr.bf16.mxu1 %v4236_v46 }
 0x23d   :  { %2518 = vmatpush1.bf16.msra.mxu0 %v4231_v47  ;;  %2604 = vmatpush1.bf16.msra.mxu1 %v4234_v48 }
 0x23e   :  { %2519 = vmatprep.subr.bf16.mxu0 %v4239_v49  ;;  %2605 = vmatprep.subr.bf16.mxu1 %v4242_v50  ;;  %v4261_v49 = vld [vmem:[%s5720_s7 + $0x200] ss:$16 sps:$4 sm:$0xff]   ;;  %v4264_v50 = vld [vmem:[%s5720_s7 + $0x208] ss:$16 sps:$4 sm:$0xff]  }
 0x241   :  { %2520 = vmatpush1.bf16.msra.mxu0 %v4237_v51  ;;  %2606 = vmatpush1.bf16.msra.mxu1 %v4240_v52  ;;  %v4269_v51 = vld [vmem:[%s5720_s7 + $0x224] ss:$16 sps:$4 sm:$0xff]   ;;  %v4272_v52 = vld [vmem:[%s5720_s7 + $0x22c] ss:$16 sps:$4 sm:$0xff]  }
 0x242   :  { %2521 = vmatprep.subr.bf16.mxu0 %v4245_v53  ;;  %2607 = vmatprep.subr.bf16.mxu1 %v4248_v54  ;;  %v4267_v53 = vld [vmem:[%s5720_s7 + $0x220] ss:$16 sps:$4 sm:$0xff]   ;;  %v4270_v54 = vld [vmem:[%s5720_s7 + $0x228] ss:$16 sps:$4 sm:$0xff]  }
 0x245   :  { %2522 = vmatpush1.bf16.msra.mxu0 %v4243_v55  ;;  %2608 = vmatpush1.bf16.msra.mxu1 %v4246_v56  ;;  %v4275_v55 = vld [vmem:[%s5720_s7 + $0x244] ss:$16 sps:$4 sm:$0xff]   ;;  %v4278_v56 = vld [vmem:[%s5720_s7 + $0x24c] ss:$16 sps:$4 sm:$0xff]  }
 0x246   :  { %2523 = vmatprep.subr.bf16.mxu0 %v4251_v57  ;;  %2609 = vmatprep.subr.bf16.mxu1 %v4254_v58  ;;  %v4273_v57 = vld [vmem:[%s5720_s7 + $0x240] ss:$16 sps:$4 sm:$0xff]   ;;  %v4276_v58 = vld [vmem:[%s5720_s7 + $0x248] ss:$16 sps:$4 sm:$0xff]  }
 0x249   :  { %2524 = vmatpush1.bf16.msra.mxu0 %v4249_v59  ;;  %2610 = vmatpush1.bf16.msra.mxu1 %v4252_v60  ;;  %v4281_v59 = vld [vmem:[%s5720_s7 + $0x264] ss:$16 sps:$4 sm:$0xff]   ;;  %v4284_v60 = vld [vmem:[%s5720_s7 + $0x26c] ss:$16 sps:$4 sm:$0xff]  }
 0x24a   :  { %2525 = vmatprep.subr.bf16.mxu0 %v4257_v61  ;;  %2611 = vmatprep.subr.bf16.mxu1 %v4260_v62  ;;  %v4279_v61 = vld [vmem:[%s5720_s7 + $0x260] ss:$16 sps:$4 sm:$0xff]   ;;  %v4282_v62 = vld [vmem:[%s5720_s7 + $0x268] ss:$16 sps:$4 sm:$0xff]  }
 0x24d   :  { %2526 = vmatpush1.bf16.msra.mxu0 %v4255_v63  ;;  %2612 = vmatpush1.bf16.msra.mxu1 %v4258_v0  ;;  %v4287_v63 = vld [vmem:[%s5720_s7 + $0x284] ss:$16 sps:$4 sm:$0xff]   ;;  %v4290_v0 = vld [vmem:[%s5720_s7 + $0x28c] ss:$16 sps:$4 sm:$0xff]  }
 0x24e   :  { %2538 = vmatprep.subr.bf16.mxu0 %v4263_v1  ;;  %2624 = vmatprep.subr.bf16.mxu1 %v4266_v3  ;;  %v4285_v1 = vld [vmem:[%s5720_s7 + $0x280] ss:$16 sps:$4 sm:$0xff]   ;;  %v4288_v3 = vld [vmem:[%s5720_s7 + $0x288] ss:$16 sps:$4 sm:$0xff]  }
 0x2e3   :  { %v1747_v9 = vpop.f32.mrb[4].mxu0  ;;  %v1833_v10 = vpop.f32.mrb[12].mxu1 }
 0x2e4   :  { %v3810_v11 = vadd.f32 %v1747_v9, %v1150_v5  ;;  %v3814_v12 = vadd.f32 %v1833_v10, %v1158_v6  ;;  %v1749_v13 = vpop.f32.mrb[5].mxu0  ;;  %v1835_v14 = vpop.f32.mrb[13].mxu1  ;;  %v4302_v9 = vld [vmem:[%s5720_s7 + $0x2cc] ss:$16 sps:$4 sm:$0xff]   ;;  %v4297_v10 = vld [vmem:[%s5720_s7 + $0x2c0] ss:$16 sps:$4 sm:$0xff]  }
 0x2e5   :  { %v3811_v15 = vadd.f32 %v1749_v13, %v1154_v7  ;;  %v3815_v16 = vadd.f32 %v1835_v14, %v1162_v8  ;;  %v1751_v18 = vpop.f32.mrb[6].mxu0  ;;  %v1837_v20 = vpop.f32.mrb[14].mxu1  ;;  %v4308_v13 = vld [vmem:[%s5720_s7 + $0x2ec] ss:$16 sps:$4 sm:$0xff]   ;;  %v4303_v14 = vld [vmem:[%s5720_s7 + $0x2e0] ss:$16 sps:$4 sm:$0xff]  }
 0x2e6   :  { %vm1842_vm4 = vcmp.gt.f32.partialorder %v3810_v11, 0.0  ;;  %v1850_v21 = vmul.f32 0.01, %v3810_v11  ;;  %vm1844_vm5 = vcmp.gt.f32.partialorder %v3814_v12, 0.0  ;;  %v1852_v22 = vmul.f32 0.01, %v3814_v12 }
 0x2e7   :  { %vm1843_vm6 = vcmp.gt.f32.partialorder %v3811_v15, 0.0  ;;  %v1851_v23 = vmul.f32 0.01, %v3811_v15  ;;  %vm1845_vm7 = vcmp.gt.f32.partialorder %v3815_v16, 0.0  ;;  %v1853_v24 = vmul.f32 0.01, %v3815_v16 }
 0x2e8   :  { %v3812_v26 = vadd.f32 %v1751_v18, %v1150_v5  ;;  %v3816_v27 = vadd.f32 %v1837_v20, %v1158_v6  ;;  %v1753_v29 = vpop.f32.mrb[7].mxu0  ;;  %v1839_v30 = vpop.f32.mrb[15].mxu1  ;;  %v1858_v31 = vsel %vm1842_vm4, %v3810_v11, %v1850_v21  ;;  %v1860_v32 = vsel %vm1844_vm5, %v3814_v12, %v1852_v22  ;;  %v4296_v5 = vld [vmem:[%s5720_s7 + $0x2ac] ss:$16 sps:$4 sm:$0xff]   ;;  %v4291_v6 = vld [vmem:[%s5720_s7 + $0x2a0] ss:$16 sps:$4 sm:$0xff]  }
 0x2e9   :  { %v3813_v33 = vadd.f32 %v1753_v29, %v1154_v7  ;;  %v3817_v34 = vadd.f32 %v1839_v30, %v1162_v8  ;;  %v1861_v39 = vsel %vm1845_vm7, %v3815_v16, %v1853_v24  ;;  %v1859_v42 = vsel %vm1843_vm6, %v3811_v15, %v1851_v23  ;;  %v4294_v7 = vld [vmem:[%s5720_s7 + $0x2a8] ss:$16 sps:$4 sm:$0xff]   ;;  %v4299_v8 = vld [vmem:[%s5720_s7 + $0x2c4] ss:$16 sps:$4 sm:$0xff]   ;;  %v4314_v18 = vld [vmem:[%s5720_s7 + $0x30c] ss:$16 sps:$4 sm:$0xff]  }
 0x2ea   :  { %vm1846_vm8 = vcmp.gt.f32.partialorder %v3812_v26, 0.0  ;;  %v1854_v35 = vmul.f32 0.01, %v3812_v26  ;;  %vm1848_vm9 = vcmp.gt.f32.partialorder %v3816_v27, 0.0  ;;  %v1856_v36 = vmul.f32 0.01, %v3816_v27 }
 0x2eb   :  { %vm1847_vm11 = vcmp.gt.f32.partialorder %v3813_v33, 0.0  ;;  %v1855_v37 = vmul.f32 0.01, %v3813_v33  ;;  %vm1849_vm12 = vcmp.gt.f32.partialorder %v3817_v34, 0.0  ;;  %v1857_v38 = vmul.f32 0.01, %v3817_v34 }
 0x2ec   :  { %v1862_v40 = vsel %vm1846_vm8, %v3812_v26, %v1854_v35  ;;  %v1864_v41 = vsel %vm1848_vm9, %v3816_v27, %v1856_v36  ;;  %v4300_v11 = vld [vmem:[%s5720_s7 + $0x2c8] ss:$16 sps:$4 sm:$0xff]   ;;  %v4305_v12 = vld [vmem:[%s5720_s7 + $0x2e4] ss:$16 sps:$4 sm:$0xff]   ;;  %v4309_v20 = vld [vmem:[%s5720_s7 + $0x300] ss:$16 sps:$4 sm:$0xff]  }
 0x2ed   :  { %v1866_v43 = vpack.c.bf16 %v1862_v40, %v1858_v31  ;;  %v5356_v44 = vpack.c.bf16 %v1864_v41, %v1860_v32  ;;  %v1865_v45 = vsel %vm1849_vm12, %v3817_v34, %v1857_v38  ;;  %v1863_v46 = vsel %vm1847_vm11, %v3813_v33, %v1855_v37  ;;  %v4306_v15 = vld [vmem:[%s5720_s7 + $0x2e8] ss:$16 sps:$4 sm:$0xff]   ;;  %v4311_v16 = vld [vmem:[%s5720_s7 + $0x304] ss:$16 sps:$4 sm:$0xff]  }
 0x2ee   :  { %v1869_v47 = vpack.c.bf16 %v1865_v45, %v1861_v39  ;;  %v1867_v48 = vpack.c.bf16 %v1863_v46, %v1859_v42  ;;  %v4312_v21 = vld [vmem:[%s5720_s7 + $0x308] ss:$16 sps:$4 sm:$0xff]   ;;  %v4317_v22 = vld [vmem:[%s5722_s9 + $0x4] ss:$8 sps:$4 sm:$0xff]   ;;  %v4320_v24 = vld [vmem:[%s5722_s9 + $0x14] ss:$8 sps:$4 sm:$0xff]  }
 0x2ef   :  { %v4315_v23 = vld [vmem:[%s5722_s9] ss:$8 sps:$4 sm:$0xff]   ;;  %v4318_v26 = vld [vmem:[%s5722_s9 + $0x10] ss:$8 sps:$4 sm:$0xff]   ;;  %v4323_v27 = vld [vmem:[%s5722_s9 + $0x24] ss:$8 sps:$4 sm:$0xff]  }
 0x2f0   :  { %2527 = vmatprep.mubr.bf16.mxu0 %v1867_v48  ;;  %2613 = vmatprep.mubr.bf16.mxu1 %v1867_v48  ;;  %v4321_v29 = vld [vmem:[%s5722_s9 + $0x20] ss:$8 sps:$4 sm:$0xff]   ;;  %v4326_v30 = vld [vmem:[%s5722_s9 + $0x34] ss:$8 sps:$4 sm:$0xff]   ;;  %v4324_v31 = vld [vmem:[%s5722_s9 + $0x30] ss:$8 sps:$4 sm:$0xff]  }
 0x2f1   :  { %2528 = vmatmul.mubr.bf16.vlgmr.msra.gmra.mrb[8].mxu0 %v1866_v43  ;;  %2614 = vmatmul.mubr.bf16.vlgmr.msra.gmra.mrb[16].mxu1 %v1866_v43  ;;  %v4329_v32 = vld [vmem:[%s5722_s9 + $0x44] ss:$8 sps:$4 sm:$0xff]   ;;  %v4327_v33 = vld [vmem:[%s5722_s9 + $0x40] ss:$8 sps:$4 sm:$0xff]   ;;  %v4332_v34 = vld [vmem:[%s5722_s9 + $0x54] ss:$8 sps:$4 sm:$0xff]  }
 0x2f2   :  { %2539 = vmatpush1.bf16.msra.mxu0 %v4261_v49  ;;  %2625 = vmatpush1.bf16.msra.mxu1 %v4264_v50  ;;  %v4330_v35 = vld [vmem:[%s5722_s9 + $0x50] ss:$8 sps:$4 sm:$0xff]   ;;  %v4335_v36 = vld [vmem:[%s5722_s9 + $0x64] ss:$8 sps:$4 sm:$0xff]   ;;  %v4333_v37 = vld [vmem:[%s5722_s9 + $0x60] ss:$8 sps:$4 sm:$0xff]  }
 0x2f3   :  { %3699 = vmatprep.mubr.msk.bf16.mxu0 %vm841_vm10, %v1869_v47  ;;  %3700 = vmatprep.mubr.msk.bf16.mxu1 %vm841_vm10, %v1869_v47  ;;  %v4338_v38 = vld [vmem:[%s5722_s9 + $0x74] ss:$8 sps:$4 sm:$0xff]   ;;  %v4336_v39 = vld [vmem:[%s5722_s9 + $0x70] ss:$8 sps:$4 sm:$0xff]   ;;  %v4341_v40 = vld [vmem:[%s5722_s9 + $0x84] ss:$8 sps:$4 sm:$0xff]  }
 0x2f4   :  { %2540 = vmatprep.subr.bf16.mxu0 %v4269_v51  ;;  %2626 = vmatprep.subr.bf16.mxu1 %v4272_v52  ;;  %v4339_v41 = vld [vmem:[%s5722_s9 + $0x80] ss:$8 sps:$4 sm:$0xff]   ;;  %v4344_v42 = vld [vmem:[%s5722_s9 + $0x94] ss:$8 sps:$4 sm:$0xff]   ;;  %v4342_v43 = vld [vmem:[%s5722_s9 + $0x90] ss:$8 sps:$4 sm:$0xff]  }
 0x2f5   :  { %v4345_v45 = vld [vmem:[%s5722_s9 + $0xa0] ss:$8 sps:$4 sm:$0xff]   ;;  %v4350_v46 = vld [vmem:[%s5722_s9 + $0xb4] ss:$8 sps:$4 sm:$0xff]   ;;  %v4348_v47 = vld [vmem:[%s5722_s9 + $0xb0] ss:$8 sps:$4 sm:$0xff]  }
 0x2f6   :  { %2541 = vmatpush1.bf16.msra.mxu0 %v4267_v53  ;;  %2627 = vmatpush1.bf16.msra.mxu1 %v4270_v54  ;;  %v4353_v48 = vld [vmem:[%s5722_s9 + $0xc4] ss:$8 sps:$4 sm:$0xff]   ;;  %v4351_v49 = vld [vmem:[%s5722_s9 + $0xc0] ss:$8 sps:$4 sm:$0xff]   ;;  %v4356_v50 = vld [vmem:[%s5722_s9 + $0xd4] ss:$8 sps:$4 sm:$0xff]  }
 0x2f7   :  { %2542 = vmatprep.subr.bf16.mxu0 %v4275_v55  ;;  %2628 = vmatprep.subr.bf16.mxu1 %v4278_v56  ;;  %v4354_v51 = vld [vmem:[%s5722_s9 + $0xd0] ss:$8 sps:$4 sm:$0xff]   ;;  %v4359_v52 = vld [vmem:[%s5722_s9 + $0xe4] ss:$8 sps:$4 sm:$0xff]   ;;  %v4357_v53 = vld [vmem:[%s5722_s9 + $0xe0] ss:$8 sps:$4 sm:$0xff]  }
 0x2f8   :  { %v4362_v54 = vld [vmem:[%s5722_s9 + $0xf4] ss:$8 sps:$4 sm:$0xff]   ;;  %v4360_v55 = vld [vmem:[%s5722_s9 + $0xf0] ss:$8 sps:$4 sm:$0xff]   ;;  %v4365_v56 = vld [vmem:[%s5722_s9 + $0x104] ss:$8 sps:$4 sm:$0xff]  }
 0x2f9   :  { %vm3217_vm8 = vcmask 588800   ;;  %vm3335_vm9 = vcmask 1041408   ;;  %vm4412_vm11 = vmmov 0  }
 0x2fa   :  { %2543 = vmatpush1.bf16.msra.mxu0 %v4273_v57  ;;  %2629 = vmatpush1.bf16.msra.mxu1 %v4276_v58  ;;  %v4390_v57 = vld [vmem:[%s5724_s11] sm:$0xff]   ;;  %v4391_v58 = vld [vmem:[%s5724_s11 + $0x8] sm:$0xff]  }
 0x2fb   :  { %2544 = vmatprep.subr.bf16.mxu0 %v4281_v59  ;;  %2630 = vmatprep.subr.bf16.mxu1 %v4284_v60  ;;  %v4392_v59 = vld [vmem:[%s5724_s11 + $0x10] sm:$0xff]   ;;  %v4393_v60 = vld [vmem:[%s5724_s11 + $0x18] sm:$0xff]  }
 0x2fe   :  { %2545 = vmatpush1.bf16.msra.mxu0 %v4279_v61  ;;  %2631 = vmatpush1.bf16.msra.mxu1 %v4282_v62  ;;  %v4394_v61 = vld [vmem:[%s5724_s11 + $0x20] sm:$0xff]   ;;  %v4395_v62 = vld [vmem:[%s5724_s11 + $0x28] sm:$0xff]  }
 0x2ff   :  { %2546 = vmatprep.subr.bf16.mxu0 %v4287_v63  ;;  %2632 = vmatprep.subr.bf16.mxu1 %v4290_v0  ;;  %v4396_v63 = vld [vmem:[%s5724_s11 + $0x30] sm:$0xff]   ;;  %v4397_v0 = vld [vmem:[%s5724_s11 + $0x38] sm:$0xff]  }
 0x302   :  { %2547 = vmatpush1.bf16.msra.mxu0 %v4285_v1  ;;  %2633 = vmatpush1.bf16.msra.mxu1 %v4288_v3  ;;  %v4398_v1 = vld [vmem:[%s5724_s11 + $0x40] sm:$0xff]   ;;  %v4399_v3 = vld [vmem:[%s5724_s11 + $0x48] sm:$0xff]  }
 0x303   :  { %2548 = vmatprep.subr.bf16.mxu0 %v4293_v4  ;;  %2634 = vmatprep.subr.bf16.mxu1 %v4296_v5  ;;  %v1970_v4 = vld [vmem:[%s5725_s8] sm:$0xf] }
 0x304   :  { %v1975_v5 = vrot.slane %v1970_v4, %v4711_v17 }
 0x306   :  { %2549 = vmatpush1.bf16.msra.mxu0 %v4291_v6  ;;  %2635 = vmatpush1.bf16.msra.mxu1 %v4294_v7  ;;  %v1983_v6 = vrot.slane %v1970_v4, %v4720_v25  ;;  %v1979_v7 = vrot.slane %v1970_v4, %v4716_v19 }
 0x307   :  { %2550 = vmatprep.subr.bf16.mxu0 %v4299_v8  ;;  %2636 = vmatprep.subr.bf16.mxu1 %v4302_v9  ;;  %v1987_v8 = vrot.slane %v1970_v4, %v4722_v28 }
 0x30a   :  { %2551 = vmatpush1.bf16.msra.mxu0 %v4297_v10  ;;  %2637 = vmatpush1.bf16.msra.mxu1 %v4300_v11 }
 0x30b   :  { %2552 = vmatprep.subr.bf16.mxu0 %v4305_v12  ;;  %2638 = vmatprep.subr.bf16.mxu1 %v4308_v13 }
 0x30e   :  { %2553 = vmatpush1.bf16.msra.mxu0 %v4303_v14  ;;  %2639 = vmatpush1.bf16.msra.mxu1 %v4306_v15 }
 0x30f   :  { %2554 = vmatprep.subr.bf16.mxu0 %v4311_v16  ;;  %2640 = vmatprep.subr.bf16.mxu1 %v4314_v18 }
 0x312   :  { %2555 = vmatpush1.bf16.msra.mxu0 %v4309_v20  ;;  %2641 = vmatpush1.bf16.msra.mxu1 %v4312_v21 }
 0x313   :  { %3010 = vmatprep.subr.bf16.mxu0 %v4317_v22  ;;  %3224 = vmatprep.subr.bf16.mxu1 %v4410_v2 }
 0x315   :  { %2571 = vmatmul.mubr.bf16.vlgmr.msra.gmra.mrb[8].mxu0 %v5356_v44  ;;  %2657 = vmatmul.mubr.bf16.vlgmr.msra.gmra.mrb[16].mxu1 %v5356_v44  ;;  %v4347_v44 = vld [vmem:[%s5722_s9 + $0xa4] ss:$8 sps:$4 sm:$0xff]  }
 0x316   :  { %3011 = vmatpush1.bf16.msra.mxu0 %v4315_v23  ;;  %3225 = vmatpush1.bf16.msra.mxu1 %v4390_v57  ;;  %v4378_v57 = vld [vmem:[%s5722_s9 + $0x150] ss:$8 sps:$4 sm:$0xff]  }
 0x317   :  { %3012 = vmatprep.subr.bf16.mxu0 %v4320_v24  ;;  %3226 = vmatprep.subr.bf16.mxu1 %v4410_v2 }
 0x31a   :  { %3013 = vmatpush1.bf16.msra.mxu0 %v4318_v26  ;;  %3227 = vmatpush1.bf16.msra.mxu1 %v4391_v58  ;;  %v4383_v58 = vld [vmem:[%s5722_s9 + $0x164] ss:$8 sps:$4 sm:$0xff]  }
 0x31b   :  { %3014 = vmatprep.subr.bf16.mxu0 %v4323_v27  ;;  %3228 = vmatprep.subr.bf16.mxu1 %v4410_v2 }
 0x31e   :  { %3015 = vmatpush1.bf16.msra.mxu0 %v4321_v29  ;;  %3229 = vmatpush1.bf16.msra.mxu1 %v4392_v59  ;;  %v4381_v59 = vld [vmem:[%s5722_s9 + $0x160] ss:$8 sps:$4 sm:$0xff]  }
 0x31f   :  { %3016 = vmatprep.subr.bf16.mxu0 %v4326_v30  ;;  %3230 = vmatprep.subr.bf16.mxu1 %v4410_v2 }
 0x322   :  { %3017 = vmatpush1.bf16.msra.mxu0 %v4324_v31  ;;  %3231 = vmatpush1.bf16.msra.mxu1 %v4393_v60  ;;  %v4386_v60 = vld [vmem:[%s5722_s9 + $0x174] ss:$8 sps:$4 sm:$0xff]  }
 0x323   :  { %3018 = vmatprep.subr.bf16.mxu0 %v4329_v32  ;;  %3232 = vmatprep.subr.bf16.mxu1 %v4410_v2 }
 0x326   :  { %3019 = vmatpush1.bf16.msra.mxu0 %v4327_v33  ;;  %3233 = vmatpush1.bf16.msra.mxu1 %v4394_v61  ;;  %v4384_v61 = vld [vmem:[%s5722_s9 + $0x170] ss:$8 sps:$4 sm:$0xff]  }
 0x327   :  { %3020 = vmatprep.subr.bf16.mxu0 %v4332_v34  ;;  %3234 = vmatprep.subr.bf16.mxu1 %v4410_v2 }
 0x32a   :  { %3021 = vmatpush1.bf16.msra.mxu0 %v4330_v35  ;;  %3235 = vmatpush1.bf16.msra.mxu1 %v4395_v62  ;;  %v4389_v62 = vld [vmem:[%s5722_s9 + $0x184] ss:$8 sps:$4 sm:$0xff]  }
 0x32b   :  { %3022 = vmatprep.subr.bf16.mxu0 %v4335_v36  ;;  %3236 = vmatprep.subr.bf16.mxu1 %v4410_v2 }
 0x32e   :  { %3023 = vmatpush1.bf16.msra.mxu0 %v4333_v37  ;;  %3237 = vmatpush1.bf16.msra.mxu1 %v4396_v63  ;;  %v4387_v63 = vld [vmem:[%s5722_s9 + $0x180] ss:$8 sps:$4 sm:$0xff]  }
 0x32f   :  { %3024 = vmatprep.subr.bf16.mxu0 %v4338_v38  ;;  %3238 = vmatprep.subr.bf16.mxu1 %v4410_v2 }
 0x332   :  { %3025 = vmatpush1.bf16.msra.mxu0 %v4336_v39  ;;  %3239 = vmatpush1.bf16.msra.mxu1 %v4397_v0  ;;  %v4400_v0 = vld [vmem:[%s5724_s11 + $0x50] sm:$0xff]  }
 0x333   :  { %3026 = vmatprep.subr.bf16.mxu0 %v4341_v40  ;;  %3240 = vmatprep.subr.bf16.mxu1 %v4410_v2 }
 0x336   :  { %3027 = vmatpush1.bf16.msra.mxu0 %v4339_v41  ;;  %3241 = vmatpush1.bf16.msra.mxu1 %v4398_v1  ;;  %v4401_v1 = vld [vmem:[%s5724_s11 + $0x58] sm:$0xff]  }
 0x337   :  { %3028 = vmatprep.subr.bf16.mxu0 %v4344_v42  ;;  %3242 = vmatprep.subr.bf16.mxu1 %v4410_v2 }
 0x33a   :  { %3029 = vmatpush1.bf16.msra.mxu0 %v4342_v43  ;;  %3243 = vmatpush1.bf16.msra.mxu1 %v4399_v3  ;;  %v4402_v3 = vld [vmem:[%s5724_s11 + $0x60] ss:$0 sps:$4 sm:$0xff]  }
 0x33b   :  { %3030 = vmatprep.subr.bf16.mxu0 %v4347_v44  ;;  %3244 = vmatprep.subr.bf16.mxu1 %v4410_v2  ;;  %v3222_v4 = vsel %vm92_vm0, %v4402_v3, 0 }
 0x33e   :  { %3031 = vmatpush1.bf16.msra.mxu0 %v4345_v45  ;;  %3245 = vmatpush1.bf16.msra.mxu1 %v4400_v0 }
 0x33f   :  { %3032 = vmatprep.subr.bf16.mxu0 %v4350_v46  ;;  %3246 = vmatprep.subr.bf16.mxu1 %v4410_v2 }
 0x342   :  { %3033 = vmatpush1.bf16.msra.mxu0 %v4348_v47  ;;  %v4363_v47 = vld [vmem:[%s5722_s9 + $0x100] ss:$8 sps:$4 sm:$0xff]   ;;  %3247 = vmatpush1.bf16.msra.mxu1 %v4401_v1 }
 0x343   :  { %3034 = vmatprep.subr.bf16.mxu0 %v4353_v48  ;;  %v4368_v48 = vld [vmem:[%s5722_s9 + $0x114] ss:$8 sps:$4 sm:$0xff]   ;;  %3248 = vmatprep.subr.bf16.mxu1 %v4410_v2 }
 0x346   :  { %3035 = vmatpush1.bf16.msra.mxu0 %v4351_v49  ;;  %v4366_v49 = vld [vmem:[%s5722_s9 + $0x110] ss:$8 sps:$4 sm:$0xff]   ;;  %3249 = vmatpush1.bf16.msra.mxu1 %v3222_v4 }
 0x347   :  { %3036 = vmatprep.subr.bf16.mxu0 %v4356_v50  ;;  %v4371_v50 = vld [vmem:[%s5722_s9 + $0x124] ss:$8 sps:$4 sm:$0xff]  }
 0x34a   :  { %3037 = vmatpush1.bf16.msra.mxu0 %v4354_v51  ;;  %v4369_v51 = vld [vmem:[%s5722_s9 + $0x120] ss:$8 sps:$4 sm:$0xff]  }
 0x34b   :  { %3038 = vmatprep.subr.bf16.mxu0 %v4359_v52  ;;  %v4374_v52 = vld [vmem:[%s5722_s9 + $0x134] ss:$8 sps:$4 sm:$0xff]  }
 0x34e   :  { %3039 = vmatpush1.bf16.msra.mxu0 %v4357_v53  ;;  %v4372_v53 = vld [vmem:[%s5722_s9 + $0x130] ss:$8 sps:$4 sm:$0xff]  }
 0x34f   :  { %3040 = vmatprep.subr.bf16.mxu0 %v4362_v54  ;;  %v4377_v54 = vld [vmem:[%s5722_s9 + $0x144] ss:$8 sps:$4 sm:$0xff]  }
 0x352   :  { %3041 = vmatpush1.bf16.msra.mxu0 %v4360_v55  ;;  %v4375_v55 = vld [vmem:[%s5722_s9 + $0x140] ss:$8 sps:$4 sm:$0xff]  }
 0x353   :  { %3053 = vmatprep.subr.bf16.mxu0 %v4365_v56  ;;  %v4380_v56 = vld [vmem:[%s5722_s9 + $0x154] ss:$8 sps:$4 sm:$0xff]  }
 0x3e8   :  { %v2572_v9 = vpop.f32.mrb[8].mxu0  ;;  %v2658_v10 = vpop.f32.mrb[16].mxu1 }
 0x3e9   :  { %v3818_v11 = vadd.f32 %v2572_v9, %v1975_v5  ;;  %v3822_v12 = vadd.f32 %v2658_v10, %v1983_v6  ;;  %v2574_v13 = vpop.f32.mrb[9].mxu0  ;;  %v2660_v14 = vpop.f32.mrb[17].mxu1 }
 0x3ea   :  { %v3819_v15 = vadd.f32 %v2574_v13, %v1979_v7  ;;  %v3823_v16 = vadd.f32 %v2660_v14, %v1987_v8  ;;  %v2576_v18 = vpop.f32.mrb[10].mxu0  ;;  %v2662_v20 = vpop.f32.mrb[18].mxu1 }
 0x3eb   :  { %vm2667_vm13 = vcmp.gt.f32.partialorder %v3818_v11, 0.0  ;;  %v2675_v21 = vmul.f32 0.01, %v3818_v11  ;;  %vm2669_vm14 = vcmp.gt.f32.partialorder %v3822_v12, 0.0  ;;  %v2677_v22 = vmul.f32 0.01, %v3822_v12 }
 0x3ec   :  { %vm2668_vm15 = vcmp.gt.f32.partialorder %v3819_v15, 0.0  ;;  %v2676_v25 = vmul.f32 0.01, %v3819_v15  ;;  %vm2670_vm1 = vcmp.gt.f32.partialorder %v3823_v16, 0.0  ;;  %v2678_v23 = vmul.f32 0.01, %v3823_v16 }
 0x3ed   :  { %v3820_v24 = vadd.f32 %v2576_v18, %v1975_v5  ;;  %v3824_v28 = vadd.f32 %v2662_v20, %v1983_v6  ;;  %v2578_v26 = vpop.f32.mrb[11].mxu0  ;;  %v2664_v27 = vpop.f32.mrb[19].mxu1  ;;  %v2683_v29 = vsel %vm2667_vm13, %v3818_v11, %v2675_v21  ;;  %v2685_v30 = vsel %vm2669_vm14, %v3822_v12, %v2677_v22  ;;  %v2745_v6 = vld [vmem:[%s5727_s10] sm:$0x3] }
 0x3ee   :  { %v3821_v31 = vadd.f32 %v2578_v26, %v1979_v7  ;;  %v3825_v32 = vadd.f32 %v2664_v27, %v1987_v8  ;;  %v2686_v37 = vsel %vm2670_vm1, %v3823_v16, %v2678_v23  ;;  %v2684_v40 = vsel %vm2668_vm15, %v3819_v15, %v2676_v25  ;;  %v4404_v26 = vld [vmem:[%s5726_s13 + $0x8] sm:$0xff]   ;;  %v4405_v27 = vld [vmem:[%s5726_s13 + $0x10] sm:$0xff]  }
 0x3ef   :  { %vm2671_vm2 = vcmp.gt.f32.partialorder %v3820_v24, 0.0  ;;  %v2679_v33 = vmul.f32 0.01, %v3820_v24  ;;  %vm2673_vm3 = vcmp.gt.f32.partialorder %v3824_v28, 0.0  ;;  %v2681_v34 = vmul.f32 0.01, %v3824_v28 }
 0x3f0   :  { %vm2672_vm4 = vcmp.gt.f32.partialorder %v3821_v31, 0.0  ;;  %v2680_v35 = vmul.f32 0.01, %v3821_v31  ;;  %vm2674_vm5 = vcmp.gt.f32.partialorder %v3825_v32, 0.0  ;;  %v2682_v36 = vmul.f32 0.01, %v3825_v32 }
 0x3f1   :  { %v2687_v38 = vsel %vm2671_vm2, %v3820_v24, %v2679_v33  ;;  %v2689_v39 = vsel %vm2673_vm3, %v3824_v28, %v2681_v34  ;;  %v4411_v5 = vmov 0.0   ;;  %v2750_v7 = vrot.slane %v2745_v6, %v4711_v17  ;;  %v4403_v28 = vld [vmem:[%s5726_s13] sm:$0xff]  }
 0x3f2   :  { %v2691_v41 = vpack.c.bf16 %v2687_v38, %v2683_v29  ;;  %v2693_v42 = vpack.c.bf16 %v2689_v39, %v2685_v30  ;;  %v2690_v43 = vsel %vm2674_vm5, %v3825_v32, %v2682_v36  ;;  %v2688_v44 = vsel %vm2672_vm4, %v3821_v31, %v2680_v35  ;;  %3784 = vmatprep.subr.bf16.mxu1 %v4411_v5  ;;  %v4406_v29 = vld [vmem:[%s5726_s13 + $0x18] sm:$0xff]   ;;  %v4407_v30 = vld [vmem:[%s5726_s13 + $0x20] sm:$0xff]   ;;  %v4408_v31 = vld [vmem:[%s5726_s13 + $0x28] sm:$0xff]  }
 0x3f3   :  { %v2694_v45 = vpack.c.bf16 %v2690_v43, %v2686_v37  ;;  %v2692_v46 = vpack.c.bf16 %v2688_v44, %v2684_v40  ;;  %v2754_v8 = vrot.slane %v2745_v6, %v4716_v19  ;;  %v4409_v32 = vld [vmem:[%s5726_s13 + $0x30] ss:$0 sps:$4 sm:$0x33]   ;;  %v3752_v34 = vld [vmem:[%s5728_s12] ss:$0 sm:$0xff]  ;;  %vm3331_vm14 = vcmask 818176  }
 0x3f4   :  { %v3337_v33 = vsel %vm3335_vm9, %v4409_v32, 0  ;;  %vm3380_vm15 = vcmask 31744  }
 0x3f5   :  { %3042 = vmatprep.mubr.bf16.mxu0 %v2692_v46  ;;  %v3767_v46 = vld [vmem:[%s5729_s14] ss:$0 sm:$0xff] }
 0x3f6   :  { %3043 = vmatmul.mubr.bf16.vlgmr.msra.gmra.mrb[12].mxu0 %v2691_v41 }
 0x3f7   :  { %3054 = vmatpush1.bf16.msra.mxu0 %v4363_v47  ;;  %3751 = vmatprep.mubr.msk.bf16.mxu0 %vm841_vm10, %v2694_v45 }
 0x3f8   :  { %3055 = vmatprep.subr.bf16.mxu0 %v4368_v48 }
 0x3fb   :  { %3056 = vmatpush1.bf16.msra.mxu0 %v4366_v49 }
 0x3fc   :  { %3057 = vmatprep.subr.bf16.mxu0 %v4371_v50 }
 0x3ff   :  { %3058 = vmatpush1.bf16.msra.mxu0 %v4369_v51 }
 0x400   :  { %3059 = vmatprep.subr.bf16.mxu0 %v4374_v52 }
 0x403   :  { %3060 = vmatpush1.bf16.msra.mxu0 %v4372_v53 }
 0x404   :  { %3061 = vmatprep.subr.bf16.mxu0 %v4377_v54 }
 0x407   :  { %3062 = vmatpush1.bf16.msra.mxu0 %v4375_v55 }
 0x408   :  { %3063 = vmatprep.subr.bf16.mxu0 %v4380_v56 }
 0x40b   :  { %3064 = vmatpush1.bf16.msra.mxu0 %v4378_v57 }
 0x40c   :  { %3065 = vmatprep.subr.bf16.mxu0 %v4383_v58 }
 0x40f   :  { %3066 = vmatpush1.bf16.msra.mxu0 %v4381_v59 }
 0x410   :  { %3067 = vmatprep.subr.bf16.mxu0 %v4386_v60 }
 0x413   :  { %3068 = vmatpush1.bf16.msra.mxu0 %v4384_v61 }
 0x414   :  { %3069 = vmatprep.subr.bf16.mxu0 %v4389_v62 }
 0x417   :  { %3070 = vmatpush1.bf16.msra.mxu0 %v4387_v63 }
 0x41a   :  { %3086 = vmatmul.mubr.bf16.vlgmr.msra.gmra.mrb[12].mxu0 %v2693_v42 }
 0x4ed   :  { %v3087_v9 = vpop.f32.mrb[12].mxu0 }
 0x4ee   :  { %v3826_v10 = vadd.f32 %v3087_v9, %v2750_v7  ;;  %v3089_v2 = vpop.f32.mrb[13].mxu0 }
 0x4ef   :  { %v3827_v11 = vadd.f32 %v3089_v2, %v2754_v8  ;;  %v3091_v12 = vpop.f32.mrb[14].mxu0 }
 0x4f0   :  { %v3100_v13 = vmul.f32 0.01, %v3826_v10  ;;  %v3828_v14 = vadd.f32 %v3091_v12, %v2750_v7  ;;  %v3093_v15 = vpop.f32.mrb[15].mxu0  ;;  %vm3096_vm0 = vcmp.gt.f32.partialorder %v3826_v10, 0.0 }
 0x4f1   :  { %v3101_v16 = vmul.f32 0.01, %v3827_v11  ;;  %v3829_v18 = vadd.f32 %v3093_v15, %v2754_v8  ;;  %vm3097_vm10 = vcmp.gt.f32.partialorder %v3827_v11, 0.0 }
 0x4f2   :  { %vm3098_vm6 = vcmp.gt.f32.partialorder %v3828_v14, 0.0  ;;  %v3102_v20 = vmul.f32 0.01, %v3828_v14  ;;  %v3104_v22 = vsel %vm3096_vm0, %v3826_v10, %v3100_v13 }
 0x4f3   :  { %vm3099_vm7 = vcmp.gt.f32.partialorder %v3829_v18, 0.0  ;;  %v3103_v21 = vmul.f32 0.01, %v3829_v18  ;;  %v3105_v25 = vsel %vm3097_vm10, %v3827_v11, %v3101_v16 }
 0x4f4   :  { %v3106_v17 = vsel %vm3098_vm6, %v3828_v14, %v3102_v20 }
 0x4f5   :  { %v3108_v19 = vpack.c.bf16 %v3106_v17, %v3104_v22  ;;  %v3107_v23 = vsel %vm3099_vm7, %v3829_v18, %v3103_v21 }
 0x4f6   :  { %v3109_v24 = vpack.c.bf16 %v3107_v23, %v3105_v25 }
 0x4f8   :  { %3766 = vmatprep.mubr.msk.bf16.mxu1 %vm3217_vm8, %v3109_v24 }
 0x4f9   :  { %3257 = vmatmul.mubr.bf16.vlgmr.msra.gmra.mrb[20].mxu1 %v3108_v19 }
 0x4fa   :  { %3785 = vmatpush3.bf16.msra.mxu1 %v4403_v28  ;;  %3798 = vmatprep.mubr.msk.bf16.mxu1 %vm4412_vm11, %v4411_v5 }
 0x4fb   :  { %3786 = vmatprep.subr.bf16.mxu1 %v4411_v5 }
 0x4fe   :  { %3787 = vmatpush3.bf16.msra.mxu1 %v4404_v26 }
 0x4ff   :  { %3788 = vmatprep.subr.bf16.mxu1 %v4411_v5 }
 0x502   :  { %3789 = vmatpush3.bf16.msra.mxu1 %v4405_v27 }
 0x503   :  { %3790 = vmatprep.subr.bf16.mxu1 %v4411_v5 }
 0x506   :  { %3791 = vmatpush3.bf16.msra.mxu1 %v4406_v29 }
 0x507   :  { %3792 = vmatprep.subr.bf16.mxu1 %v4411_v5 }
 0x50a   :  { %3793 = vmatpush3.bf16.msra.mxu1 %v4407_v30 }
 0x50b   :  { %3794 = vmatprep.subr.bf16.mxu1 %v4411_v5 }
 0x50e   :  { %3795 = vmatpush3.bf16.msra.mxu1 %v4408_v31 }
 0x50f   :  { %3796 = vmatprep.subr.bf16.mxu1 %v4411_v5 }
 0x512   :  { %3797 = vmatpush3.bf16.msra.mxu1 %v3337_v33 }
 0x5cc   :  { %v3258_v35 = vpop.f32.mrb[20].mxu1 }
 0x5cd   :  { %v3259_v36 = vadd.f32 %v3752_v34, %v3258_v35  ;;  %v3260_v37 = vpop.f32.mrb[21].mxu1 }
 0x5ce   :  { %v3261_v38 = vpop.f32.mrb[22].mxu1 }
 0x5cf   :  { %v3267_v39 = vmul.f32 0.01, %v3259_v36  ;;  %v3262_v40 = vadd.f32 %v3752_v34, %v3261_v38  ;;  %v3263_v41 = vpop.f32.mrb[23].mxu1  ;;  %vm3265_vm12 = vcmp.gt.f32.partialorder %v3259_v36, 0.0 }
 0x5d1   :  { %vm3266_vm13 = vcmp.gt.f32.partialorder %v3262_v40, 0.0  ;;  %v3268_v42 = vmul.f32 0.01, %v3262_v40  ;;  %v3269_v43 = vsel %vm3265_vm12, %v3259_v36, %v3267_v39 }
 0x5d3   :  { %v3270_v44 = vsel %vm3266_vm13, %v3262_v40, %v3268_v42 }
 0x5d4   :  { %v3271_v45 = vpack.c.bf16 %v3270_v44, %v3269_v43 }
 0x5d6   :  { %3799 = vmatmul.mubr.msk.bf16.vlgmr.msra.gmra.mrb[24].mxu1 %vm3331_vm14, %v3271_v45 }
 0x6a9   :  { %v3373_v47 = vpop.f32.mrb[24].mxu1 }
 0x6aa   :  { %v3374_v48 = vadd.f32 %v3767_v46, %v3373_v47  ;;  %v3800_v49 = vpop.f32.mrb[25].mxu1 }
 0x6ab   :  { %v3376_v50 = vpop.f32.mrb[26].mxu1 }
 0x6ac   :  { %3381 = vst.msk [vmem:[%s5730_s15] sm:$0xff] %vm3380_vm15, %v3374_v48  ;;  %v3377_v51 = vadd.f32 %v3767_v46, %v3376_v50  ;;  %v3801_v52 = vpop.f32.mrb[27].mxu1 }
 0x6ae   :  { %3382 = vst.msk [vmem:[%s5730_s15 + $0x8] sm:$0xff] %vm3380_vm15, %v3377_v51 }

</bundles_post_ra>
